<compile_context>
chip_gen: v5e
topology: v5e:2x2
jax: 0.10.0
libtpu: 0.0.40
codegen_flags: <defaults>
</compile_context>

<pallas_src>
import functools

import jax
import jax.numpy as jnp
from jax.experimental import pallas as pl
from jax.experimental.pallas import tpu as pltpu

# ----------------------------- small config ---------------------------------
VOCAB = 8              # num_class
N_EMBD = 128           # n_embd
N_LAYER = 2            # n_layer (kept small for the demo)
N_MLP_HIDDEN = 256     # n_mlp_hidden
N_I_TOKEN = 4          # zi length (T2)
N_T_TOKEN = 4          # xt length (T1)
N_TOKEN = N_I_TOKEN + N_T_TOKEN   # context_length
LN_EPS = 1e-5

# Max batch elements per grid step -> dense-matmul M = B_TILE * N_TOKEN.
# Cap 16 (M = 128): full MXU rows on v5e, and on v6e/v7x the kernel is not
# MXU-bound so M = 256 buys nothing now that attention is block-batched.
MAX_B_TILE = 16


# ------------------------- in-kernel math helpers ----------------------------
def _gelu_tanh(x):
    # tanh-based GELU: tanh runs on the EUP slot instead of burning VALU cycles
    # on the erf polynomial; |gelu_tanh - gelu_exact| < 3e-3, far inside the
    # 1e-2 reference tolerance given the tiny downstream weights.
    c = 0.7978845608028654  # sqrt(2/pi)
    return 0.5 * x * (1.0 + jnp.tanh(c * (x + 0.044715 * x * x * x)))


def _layer_norm(x, gamma, beta):
    # Single-pass stats: sum and sum-of-squares are independent reductions
    # (can pipeline on the XLU) instead of mean -> centered variance.
    inv_n = 1.0 / x.shape[-1]
    s1 = jnp.sum(x, axis=-1, keepdims=True)
    s2 = jnp.sum(x * x, axis=-1, keepdims=True)
    mu = s1 * inv_n
    var = s2 * inv_n - mu * mu
    return (x - mu) * jax.lax.rsqrt(var + LN_EPS) * gamma + beta   # rsqrt -> EUP


# ------------------------------ Pallas kernel --------------------------------
def encoder_kernel(h_ref, wq_ref, wk_ref, wv_ref, g1_ref, b1_ref,
                   wm1_ref, bm1_ref, wm2_ref, bm2_ref, g2_ref, b2_ref,
                   wro_ref, bro_ref, pred_ref, *, n_layer, n_embd, n_token,
                   b_tile):
    bt = b_tile * n_token
    inv_sqrt_d = 1.0 / (float(n_embd) ** 0.5)

    h = h_ref[...]                                              # (BT, D) f32

    for l in range(n_layer):                                    # static unroll
        # --- attention block ---
        h1 = _layer_norm(h, g1_ref[l], b1_ref[l])
        h1b = h1.astype(jnp.bfloat16)                           # bf16 MXU operand
        q = jnp.dot(h1b, wq_ref[l], preferred_element_type=jnp.float32)
        k = jnp.dot(h1b, wk_ref[l], preferred_element_type=jnp.float32)
        v = jnp.dot(h1b, wv_ref[l], preferred_element_type=jnp.float32)

        # Per-batch-element attention.  f32 reshapes that split the row dim at
        # 8-row (one-sublane-tile) boundaries are pure views -> no relayout.
        q3 = q.reshape(b_tile, n_token, n_embd)
        k3 = k.reshape(b_tile, n_token, n_embd)
        v3 = v.reshape(b_tile, n_token, n_embd)

        # scores[b, i, j] = <q_bi, k_bj>; tokens never mix across batch elems,
        # so no block-diagonal mask is needed.
        scores = jnp.einsum('bid,bjd->bij', q3, k3,
                            preferred_element_type=jnp.float32)
        scores = scores * inv_sqrt_d                            # normalize_attn
        scores = scores - jnp.max(scores, axis=-1, keepdims=True)
        e = jnp.exp(scores)                                     # (B_TILE, T, T)
        denom = jnp.sum(e, axis=-1, keepdims=True)
        attn = e * pl.reciprocal(denom, approx=True)            # EUP recip

        ctx = jnp.einsum('bij,bjd->bid', attn, v3,
                         preferred_element_type=jnp.float32)
        h = h + ctx.reshape(bt, n_embd)

        # --- MLP block ---
        h2 = _layer_norm(h, g2_ref[l], b2_ref[l])
        m = jnp.dot(h2.astype(jnp.bfloat16), wm1_ref[l],
                    preferred_element_type=jnp.float32) + bm1_ref[l]
        mb = _gelu_tanh(m).astype(jnp.bfloat16)                 # single cast pass
        h = h + (jnp.dot(mb, wm2_ref[l], preferred_element_type=jnp.float32)
                 + bm2_ref[l])

    # read-out: Linear(n_embd -> 1).  Computed as (1,D) x (BT,D)^T so the
    # result is a lane-dense (1, BT) row (unmasked stores), f32 throughout.
    pred = jax.lax.dot_general(wro_ref[...], h, (((1,), (1,)), ((), ())),
                               preferred_element_type=jnp.float32)
    pred_ref[...] = (pred + bro_ref[...]).astype(pred_ref.dtype)


# ------------------------------- wrapper --------------------------------------
def token_embeddings(xt, zi, t_emb):
    # leave_options = -((arange(vocab) - zi)^2) / 2, placed in the first VOCAB dims
    leave = -jnp.square(jnp.arange(VOCAB, dtype=jnp.float32)[None, None, :]
                        - zi[:, :, None].astype(jnp.float32)) / 2.0
    img = jnp.pad(leave, ((0, 0), (0, 0), (0, N_EMBD - VOCAB)))
    txt = t_emb[xt]                                            # (B, T1, D)
    return jnp.concatenate([img, txt], axis=1)                 # (B, T, D)


def _choose_b_tile(batch):
    # Size the tile to the real batch (no dead rows for small B) and aim for
    # >= 2 grid steps when B > 1 so the "parallel" grid axis can be sharded
    # across the two v7x TensorCores.  Cap at MAX_B_TILE (M = 128 dense rows).
    if batch <= 1:
        return 1
    return min(MAX_B_TILE, (batch + 1) // 2)


def forward(xt, zi, params):
    B, T1 = xt.shape
    T2 = zi.shape[1]
    T = T1 + T2
    D = N_EMBD

    b_tile = _choose_b_tile(B)
    bt = b_tile * T
    num_tiles = (B + b_tile - 1) // b_tile
    B_pad = num_tiles * b_tile

    # Embedding gathers / broadcasting stay in plain JAX (glue).
    H0 = token_embeddings(xt, zi, params['t_emb'])
    H0 = H0 + params['pos_emb'][:T][None, :, :]

    if B_pad != B:
        # Padded batch rows are all-zero.  They live in their own attention
        # blocks (never mixing with real rows) and are dropped after the call.
        H0 = jnp.pad(H0, ((0, B_pad - B), (0, 0), (0, 0)))
    H0 = H0.reshape(num_tiles, bt, D)

    # bf16 MXU operands (f32 accumulation in-kernel); halves weight DMA/VMEM.
    wq = params['wq'].astype(jnp.bfloat16)
    wk = params['wk'].astype(jnp.bfloat16)
    wv = params['wv'].astype(jnp.bfloat16)
    wm1 = params['wm1'].astype(jnp.bfloat16)
    wm2 = params['wm2'].astype(jnp.bfloat16)

    kernel = functools.partial(encoder_kernel, n_layer=N_LAYER, n_embd=D,
                               n_token=T, b_tile=b_tile)

    def const_spec(shape):
        zeros = (0,) * len(shape)
        return pl.BlockSpec(shape, lambda b, _z=zeros: _z)

    pred = pl.pallas_call(
        kernel,
        out_shape=jax.ShapeDtypeStruct((num_tiles, 1, bt), jnp.float32),
        grid=(num_tiles,),
        in_specs=[
            # H0 tile; footprint is tiny so default double-buffering fully
            # hides the per-step DMA on all generations.
            pl.BlockSpec((None, bt, D), lambda b: (b, 0, 0)),
            const_spec((N_LAYER, D, D)),                            # Wq (bf16)
            const_spec((N_LAYER, D, D)),                            # Wk (bf16)
            const_spec((N_LAYER, D, D)),                            # Wv (bf16)
            const_spec((N_LAYER, 1, D)),                            # ln1 gamma
            const_spec((N_LAYER, 1, D)),                            # ln1 beta
            const_spec((N_LAYER, D, N_MLP_HIDDEN)),                 # mlp W1 (bf16)
            const_spec((N_LAYER, 1, N_MLP_HIDDEN)),                 # mlp b1
            const_spec((N_LAYER, N_MLP_HIDDEN, D)),                 # mlp W2 (bf16)
            const_spec((N_LAYER, 1, D)),                            # mlp b2
            const_spec((N_LAYER, 1, D)),                            # ln2 gamma
            const_spec((N_LAYER, 1, D)),                            # ln2 beta
            const_spec((1, D)),                                     # readout w
            const_spec((1, 1)),                                     # readout b
        ],
        out_specs=pl.BlockSpec((None, 1, bt), lambda b: (b, 0, 0)),  # lane-dense
        compiler_params=pltpu.CompilerParams(dimension_semantics=("parallel",)),
    )(H0, wq, wk, wv,
      params['g1'], params['b1'],
      wm1, params['bm1'], wm2, params['bm2'],
      params['g2'], params['b2'],
      params['wro'], params['bro'])

    pred = pred.reshape(B_pad, T)[:B, :N_I_TOKEN]   # drop padding, (B, n_i_token)
    guided_layers = ([], [])                        # guide=False -> empty
    return pred, guided_layers


# -------------------------- pure-JAX reference --------------------------------
def forward_ref(xt, zi, params):
    H = token_embeddings(xt, zi, params['t_emb'])
    H = H + params['pos_emb'][:H.shape[1]][None, :, :]
    for l in range(N_LAYER):
        def ln(x, g, b):
            mu = jnp.mean(x, -1, keepdims=True)
            var = jnp.mean(jnp.square(x - mu), -1, keepdims=True)
            return (x - mu) / jnp.sqrt(var + LN_EPS) * g + b
        H1 = ln(H, params['g1'][l], params['b1'][l])
        q = H1 @ params['wq'][l]
        k = H1 @ params['wk'][l]
        v = H1 @ params['wv'][l]
        attn = jnp.einsum('bid,bjd->bij', q, k) / jnp.sqrt(N_EMBD)
        attn = jax.nn.softmax(attn, axis=-1)
        H = H + jnp.einsum('bij,bjd->bid', attn, v)
        H2 = ln(H, params['g2'][l], params['b2'][l])
        m = jax.nn.gelu(H2 @ params['wm1'][l] + params['bm1'][l], approximate=False)
        H = H + (m @ params['wm2'][l] + params['bm2'][l])
    pred = jnp.sum(H * params['wro'][None], axis=-1) + params['bro'][0, 0]
    return pred[:, :N_I_TOKEN]


# ------------------------------ parameters ------------------------------------
def init_params(key):
    keys = jax.random.split(key, 8)

    def nrm(k, shape, scale=0.02):
        return (scale * jax.random.normal(k, shape)).astype(jnp.float32)

    return dict(
        pos_emb=nrm(keys[0], (N_TOKEN, N_EMBD)),
        t_emb=nrm(keys[1], (VOCAB, N_EMBD)),
        wq=nrm(keys[2], (N_LAYER, N_EMBD, N_EMBD)),
        wk=nrm(keys[3], (N_LAYER, N_EMBD, N_EMBD)),
        wv=nrm(keys[4], (N_LAYER, N_EMBD, N_EMBD)),
        g1=jnp.ones((N_LAYER, 1, N_EMBD), jnp.float32),
        b1=jnp.zeros((N_LAYER, 1, N_EMBD), jnp.float32),
        wm1=nrm(keys[5], (N_LAYER, N_EMBD, N_MLP_HIDDEN)),
        bm1=jnp.zeros((N_LAYER, 1, N_MLP_HIDDEN), jnp.float32),
        wm2=nrm(keys[6], (N_LAYER, N_MLP_HIDDEN, N_EMBD)),
        bm2=jnp.zeros((N_LAYER, 1, N_EMBD), jnp.float32),
        g2=jnp.ones((N_LAYER, 1, N_EMBD), jnp.float32),
        b2=jnp.zeros((N_LAYER, 1, N_EMBD), jnp.float32),
        wro=nrm(keys[7], (1, N_EMBD)),
        bro=jnp.zeros((1, 1), jnp.float32),
    )


if __name__ == "__main__":
    key = jax.random.PRNGKey(0)
    kp, kx, kz = jax.random.split(key, 3)
    params = init_params(kp)

    B = 2
    xt = jax.random.randint(kx, (B, N_T_TOKEN), 0, VOCAB, dtype=jnp.int32)
    zi = jax.random.randint(kz, (B, N_I_TOKEN), 0, VOCAB, dtype=jnp.int32)

    pred, guided = forward(xt, zi, params)
    pred = jax.block_until_ready(pred)

    ref = forward_ref(xt, zi, params)
    assert pred.shape == (B, N_I_TOKEN)
    assert jnp.max(jnp.abs(pred - ref)) < 1e-2, "mismatch vs pure-JAX reference"

    print("KERNEL_OK")
</pallas_src>

<mosaic_0001>
module attributes {stable_mosaic.version = 11 : i64} {
  func.func @encoder_kernel(%arg0: i32, %arg1: memref<1x8x128xf32, #tpu.memory_space<vmem>>, %arg2: memref<2x128x128xbf16, #tpu.memory_space<vmem>>, %arg3: memref<2x128x128xbf16, #tpu.memory_space<vmem>>, %arg4: memref<2x128x128xbf16, #tpu.memory_space<vmem>>, %arg5: memref<2x1x128xf32, #tpu.memory_space<vmem>>, %arg6: memref<2x1x128xf32, #tpu.memory_space<vmem>>, %arg7: memref<2x128x256xbf16, #tpu.memory_space<vmem>>, %arg8: memref<2x1x256xf32, #tpu.memory_space<vmem>>, %arg9: memref<2x256x128xbf16, #tpu.memory_space<vmem>>, %arg10: memref<2x1x128xf32, #tpu.memory_space<vmem>>, %arg11: memref<2x1x128xf32, #tpu.memory_space<vmem>>, %arg12: memref<2x1x128xf32, #tpu.memory_space<vmem>>, %arg13: memref<1x128xf32, #tpu.memory_space<vmem>>, %arg14: memref<1x1xf32, #tpu.memory_space<vmem>>, %arg15: memref<1x1x8xf32, #tpu.memory_space<vmem>>) attributes {dimension_semantics = [#tpu.dimension_semantics<parallel>], iteration_bounds = array<i64: 2>, scalar_prefetch = 0 : i64, scratch_operands = 0 : i64, tpu.core_type = #tpu.core_type<tc>, window_params = [{transform_indices = @transform_0, window_bounds = array<i64: 1, 8, 128>}, {pipeline_mode = #tpu.pipeline_mode<synchronous>, transform_indices = @transform_1, window_bounds = array<i64: 2, 128, 128>}, {pipeline_mode = #tpu.pipeline_mode<synchronous>, transform_indices = @transform_2, window_bounds = array<i64: 2, 128, 128>}, {pipeline_mode = #tpu.pipeline_mode<synchronous>, transform_indices = @transform_3, window_bounds = array<i64: 2, 128, 128>}, {pipeline_mode = #tpu.pipeline_mode<synchronous>, transform_indices = @transform_4, window_bounds = array<i64: 2, 1, 128>}, {pipeline_mode = #tpu.pipeline_mode<synchronous>, transform_indices = @transform_5, window_bounds = array<i64: 2, 1, 128>}, {pipeline_mode = #tpu.pipeline_mode<synchronous>, transform_indices = @transform_6, window_bounds = array<i64: 2, 128, 256>}, {pipeline_mode = #tpu.pipeline_mode<synchronous>, transform_indices = @transform_7, window_bounds = array<i64: 2, 1, 256>}, {pipeline_mode = #tpu.pipeline_mode<synchronous>, transform_indices = @transform_8, window_bounds = array<i64: 2, 256, 128>}, {pipeline_mode = #tpu.pipeline_mode<synchronous>, transform_indices = @transform_9, window_bounds = array<i64: 2, 1, 128>}, {pipeline_mode = #tpu.pipeline_mode<synchronous>, transform_indices = @transform_10, window_bounds = array<i64: 2, 1, 128>}, {pipeline_mode = #tpu.pipeline_mode<synchronous>, transform_indices = @transform_11, window_bounds = array<i64: 2, 1, 128>}, {pipeline_mode = #tpu.pipeline_mode<synchronous>, transform_indices = @transform_12, window_bounds = array<i64: 1, 128>}, {pipeline_mode = #tpu.pipeline_mode<synchronous>, transform_indices = @transform_13, window_bounds = array<i64: 1, 1>}, {transform_indices = @transform_14, window_bounds = array<i64: 1, 1, 8>}]} {
    %c0 = arith.constant 0 : index
    %c0_0 = arith.constant 0 : index
    %c0_1 = arith.constant 0 : index
    %0 = vector.load %arg1[%c0, %c0_0, %c0_1] : memref<1x8x128xf32, #tpu.memory_space<vmem>>, vector<1x8x128xf32>
    %1 = vector.shape_cast %0 : vector<1x8x128xf32> to vector<8x128xf32>
    %c0_2 = arith.constant 0 : index
    %c0_3 = arith.constant 0 : index
    %c0_4 = arith.constant 0 : index
    %2 = vector.load %arg5[%c0_2, %c0_3, %c0_4] : memref<2x1x128xf32, #tpu.memory_space<vmem>>, vector<1x1x128xf32>
    %3 = vector.shape_cast %2 : vector<1x1x128xf32> to vector<1x128xf32>
    %c0_5 = arith.constant 0 : index
    %c0_6 = arith.constant 0 : index
    %c0_7 = arith.constant 0 : index
    %4 = vector.load %arg6[%c0_5, %c0_6, %c0_7] : memref<2x1x128xf32, #tpu.memory_space<vmem>>, vector<1x1x128xf32>
    %5 = vector.shape_cast %4 : vector<1x1x128xf32> to vector<1x128xf32>
    %cst = arith.constant dense<0.000000e+00> : vector<8xf32>
    %6 = vector.multi_reduction <add>, %1, %cst [1] : vector<8x128xf32> to vector<8xf32>
    %7 = vector.shape_cast %6 : vector<8xf32> to vector<8x1xf32>
    %8 = arith.mulf %1, %1 : vector<8x128xf32>
    %cst_8 = arith.constant dense<0.000000e+00> : vector<8xf32>
    %9 = vector.multi_reduction <add>, %8, %cst_8 [1] : vector<8x128xf32> to vector<8xf32>
    %10 = vector.shape_cast %9 : vector<8xf32> to vector<8x1xf32>
    %cst_9 = arith.constant 7.812500e-03 : f32
    %11 = vector.broadcast %cst_9 : f32 to vector<8x1xf32>
    %12 = arith.mulf %7, %11 : vector<8x1xf32>
    %cst_10 = arith.constant 7.812500e-03 : f32
    %13 = vector.broadcast %cst_10 : f32 to vector<8x1xf32>
    %14 = arith.mulf %10, %13 : vector<8x1xf32>
    %15 = arith.mulf %12, %12 : vector<8x1xf32>
    %16 = arith.subf %14, %15 : vector<8x1xf32>
    %17 = vector.broadcast %12 : vector<8x1xf32> to vector<8x128xf32>
    %18 = arith.subf %1, %17 : vector<8x128xf32>
    %cst_11 = arith.constant 9.99999974E-6 : f32
    %19 = vector.broadcast %cst_11 : f32 to vector<8x1xf32>
    %20 = arith.addf %16, %19 : vector<8x1xf32>
    %21 = math.rsqrt %20 : vector<8x1xf32>
    %22 = vector.broadcast %21 : vector<8x1xf32> to vector<8x128xf32>
    %23 = arith.mulf %18, %22 : vector<8x128xf32>
    %24 = vector.broadcast %3 : vector<1x128xf32> to vector<8x128xf32>
    %25 = arith.mulf %23, %24 : vector<8x128xf32>
    %26 = vector.broadcast %5 : vector<1x128xf32> to vector<8x128xf32>
    %27 = arith.addf %25, %26 : vector<8x128xf32>
    %28 = arith.truncf %27 : vector<8x128xf32> to vector<8x128xbf16>
    %c0_12 = arith.constant 0 : index
    %c0_13 = arith.constant 0 : index
    %c0_14 = arith.constant 0 : index
    %29 = vector.load %arg2[%c0_12, %c0_13, %c0_14] : memref<2x128x128xbf16, #tpu.memory_space<vmem>>, vector<1x128x128xbf16>
    %30 = vector.shape_cast %29 : vector<1x128x128xbf16> to vector<128x128xbf16>
    %cst_15 = arith.constant dense<0.000000e+00> : vector<8x128xf32>
    %31 = tpu.matmul %28, %30, %cst_15 {dimension_numbers = #tpu.dot_dimension_numbers<[1], [0], [0], [1], [0, 0, 1, 1], [], []>} : vector<8x128xbf16>, vector<128x128xbf16>, vector<8x128xf32> -> vector<8x128xf32>
    %c0_16 = arith.constant 0 : index
    %c0_17 = arith.constant 0 : index
    %c0_18 = arith.constant 0 : index
    %32 = vector.load %arg3[%c0_16, %c0_17, %c0_18] : memref<2x128x128xbf16, #tpu.memory_space<vmem>>, vector<1x128x128xbf16>
    %33 = vector.shape_cast %32 : vector<1x128x128xbf16> to vector<128x128xbf16>
    %cst_19 = arith.constant dense<0.000000e+00> : vector<8x128xf32>
    %34 = tpu.matmul %28, %33, %cst_19 {dimension_numbers = #tpu.dot_dimension_numbers<[1], [0], [0], [1], [0, 0, 1, 1], [], []>} : vector<8x128xbf16>, vector<128x128xbf16>, vector<8x128xf32> -> vector<8x128xf32>
    %c0_20 = arith.constant 0 : index
    %c0_21 = arith.constant 0 : index
    %c0_22 = arith.constant 0 : index
    %35 = vector.load %arg4[%c0_20, %c0_21, %c0_22] : memref<2x128x128xbf16, #tpu.memory_space<vmem>>, vector<1x128x128xbf16>
    %36 = vector.shape_cast %35 : vector<1x128x128xbf16> to vector<128x128xbf16>
    %cst_23 = arith.constant dense<0.000000e+00> : vector<8x128xf32>
    %37 = tpu.matmul %28, %36, %cst_23 {dimension_numbers = #tpu.dot_dimension_numbers<[1], [0], [0], [1], [0, 0, 1, 1], [], []>} : vector<8x128xbf16>, vector<128x128xbf16>, vector<8x128xf32> -> vector<8x128xf32>
    %38 = vector.shape_cast %31 : vector<8x128xf32> to vector<1x8x128xf32>
    %39 = vector.shape_cast %34 : vector<8x128xf32> to vector<1x8x128xf32>
    %40 = vector.shape_cast %37 : vector<8x128xf32> to vector<1x8x128xf32>
    "tpu.trace_start"() <{level = 10 : i32, message = "bid,bjd->bij"}> : () -> ()
    %cst_24 = arith.constant dense<0.000000e+00> : vector<1x8x8xf32>
    %41 = tpu.matmul %38, %39, %cst_24 {dimension_numbers = #tpu.dot_dimension_numbers<[2], [2], [1], [1], [0, 0, 0, 1, 1, 1], [0], [0]>} : vector<1x8x128xf32>, vector<1x8x128xf32>, vector<1x8x8xf32> -> vector<1x8x8xf32>
    "tpu.trace_stop"() : () -> ()
    %cst_25 = arith.constant 0.0883883461 : f32
    %42 = vector.broadcast %cst_25 : f32 to vector<1x8x8xf32>
    %43 = arith.mulf %41, %42 : vector<1x8x8xf32>
    %cst_26 = arith.constant dense<0xFF800000> : vector<1x8xf32>
    %44 = vector.multi_reduction <maximumf>, %43, %cst_26 [2] : vector<1x8x8xf32> to vector<1x8xf32>
    %45 = vector.shape_cast %44 : vector<1x8xf32> to vector<1x8x1xf32>
    %46 = vector.broadcast %45 : vector<1x8x1xf32> to vector<1x8x8xf32>
    %47 = arith.subf %43, %46 : vector<1x8x8xf32>
    %48 = math.exp %47 : vector<1x8x8xf32>
    %cst_27 = arith.constant dense<0.000000e+00> : vector<1x8xf32>
    %49 = vector.multi_reduction <add>, %48, %cst_27 [2] : vector<1x8x8xf32> to vector<1x8xf32>
    %50 = vector.shape_cast %49 : vector<1x8xf32> to vector<1x8x1xf32>
    %51 = tpu.reciprocal %50 {approx = true} : vector<1x8x1xf32> -> vector<1x8x1xf32>
    %52 = vector.broadcast %51 : vector<1x8x1xf32> to vector<1x8x8xf32>
    %53 = arith.mulf %48, %52 : vector<1x8x8xf32>
    "tpu.trace_start"() <{level = 10 : i32, message = "bij,bjd->bid"}> : () -> ()
    %cst_28 = arith.constant dense<0.000000e+00> : vector<1x8x128xf32>
    %54 = tpu.matmul %53, %40, %cst_28 {dimension_numbers = #tpu.dot_dimension_numbers<[2], [1], [1], [2], [0, 0, 0, 1, 1, 2], [0], [0]>} : vector<1x8x8xf32>, vector<1x8x128xf32>, vector<1x8x128xf32> -> vector<1x8x128xf32>
    "tpu.trace_stop"() : () -> ()
    %55 = vector.shape_cast %54 : vector<1x8x128xf32> to vector<8x128xf32>
    %56 = arith.addf %1, %55 : vector<8x128xf32>
    %c0_29 = arith.constant 0 : index
    %c0_30 = arith.constant 0 : index
    %c0_31 = arith.constant 0 : index
    %57 = vector.load %arg11[%c0_29, %c0_30, %c0_31] : memref<2x1x128xf32, #tpu.memory_space<vmem>>, vector<1x1x128xf32>
    %58 = vector.shape_cast %57 : vector<1x1x128xf32> to vector<1x128xf32>
    %c0_32 = arith.constant 0 : index
    %c0_33 = arith.constant 0 : index
    %c0_34 = arith.constant 0 : index
    %59 = vector.load %arg12[%c0_32, %c0_33, %c0_34] : memref<2x1x128xf32, #tpu.memory_space<vmem>>, vector<1x1x128xf32>
    %60 = vector.shape_cast %59 : vector<1x1x128xf32> to vector<1x128xf32>
    %cst_35 = arith.constant dense<0.000000e+00> : vector<8xf32>
    %61 = vector.multi_reduction <add>, %56, %cst_35 [1] : vector<8x128xf32> to vector<8xf32>
    %62 = vector.shape_cast %61 : vector<8xf32> to vector<8x1xf32>
    %63 = arith.mulf %56, %56 : vector<8x128xf32>
    %cst_36 = arith.constant dense<0.000000e+00> : vector<8xf32>
    %64 = vector.multi_reduction <add>, %63, %cst_36 [1] : vector<8x128xf32> to vector<8xf32>
    %65 = vector.shape_cast %64 : vector<8xf32> to vector<8x1xf32>
    %cst_37 = arith.constant 7.812500e-03 : f32
    %66 = vector.broadcast %cst_37 : f32 to vector<8x1xf32>
    %67 = arith.mulf %62, %66 : vector<8x1xf32>
    %cst_38 = arith.constant 7.812500e-03 : f32
    %68 = vector.broadcast %cst_38 : f32 to vector<8x1xf32>
    %69 = arith.mulf %65, %68 : vector<8x1xf32>
    %70 = arith.mulf %67, %67 : vector<8x1xf32>
    %71 = arith.subf %69, %70 : vector<8x1xf32>
    %72 = vector.broadcast %67 : vector<8x1xf32> to vector<8x128xf32>
    %73 = arith.subf %56, %72 : vector<8x128xf32>
    %cst_39 = arith.constant 9.99999974E-6 : f32
    %74 = vector.broadcast %cst_39 : f32 to vector<8x1xf32>
    %75 = arith.addf %71, %74 : vector<8x1xf32>
    %76 = math.rsqrt %75 : vector<8x1xf32>
    %77 = vector.broadcast %76 : vector<8x1xf32> to vector<8x128xf32>
    %78 = arith.mulf %73, %77 : vector<8x128xf32>
    %79 = vector.broadcast %58 : vector<1x128xf32> to vector<8x128xf32>
    %80 = arith.mulf %78, %79 : vector<8x128xf32>
    %81 = vector.broadcast %60 : vector<1x128xf32> to vector<8x128xf32>
    %82 = arith.addf %80, %81 : vector<8x128xf32>
    %83 = arith.truncf %82 : vector<8x128xf32> to vector<8x128xbf16>
    %c0_40 = arith.constant 0 : index
    %c0_41 = arith.constant 0 : index
    %c0_42 = arith.constant 0 : index
    %84 = vector.load %arg7[%c0_40, %c0_41, %c0_42] : memref<2x128x256xbf16, #tpu.memory_space<vmem>>, vector<1x128x256xbf16>
    %85 = vector.shape_cast %84 : vector<1x128x256xbf16> to vector<128x256xbf16>
    %cst_43 = arith.constant dense<0.000000e+00> : vector<8x256xf32>
    %86 = tpu.matmul %83, %85, %cst_43 {dimension_numbers = #tpu.dot_dimension_numbers<[1], [0], [0], [1], [0, 0, 1, 1], [], []>} : vector<8x128xbf16>, vector<128x256xbf16>, vector<8x256xf32> -> vector<8x256xf32>
    %c0_44 = arith.constant 0 : index
    %c0_45 = arith.constant 0 : index
    %c0_46 = arith.constant 0 : index
    %87 = vector.load %arg8[%c0_44, %c0_45, %c0_46] : memref<2x1x256xf32, #tpu.memory_space<vmem>>, vector<1x1x256xf32>
    %88 = vector.shape_cast %87 : vector<1x1x256xf32> to vector<1x256xf32>
    %89 = vector.broadcast %88 : vector<1x256xf32> to vector<8x256xf32>
    %90 = arith.addf %86, %89 : vector<8x256xf32>
    %cst_47 = arith.constant 5.000000e-01 : f32
    %91 = vector.broadcast %cst_47 : f32 to vector<8x256xf32>
    %92 = arith.mulf %91, %90 : vector<8x256xf32>
    %cst_48 = arith.constant 4.471500e-02 : f32
    %93 = vector.broadcast %cst_48 : f32 to vector<8x256xf32>
    %94 = arith.mulf %93, %90 : vector<8x256xf32>
    %95 = arith.mulf %94, %90 : vector<8x256xf32>
    %96 = arith.mulf %95, %90 : vector<8x256xf32>
    %97 = arith.addf %90, %96 : vector<8x256xf32>
    %cst_49 = arith.constant 0.797884583 : f32
    %98 = vector.broadcast %cst_49 : f32 to vector<8x256xf32>
    %99 = arith.mulf %98, %97 : vector<8x256xf32>
    %100 = math.tanh %99 : vector<8x256xf32>
    %cst_50 = arith.constant 1.000000e+00 : f32
    %101 = vector.broadcast %cst_50 : f32 to vector<8x256xf32>
    %102 = arith.addf %101, %100 : vector<8x256xf32>
    %103 = arith.mulf %92, %102 : vector<8x256xf32>
    %104 = arith.truncf %103 : vector<8x256xf32> to vector<8x256xbf16>
    %c0_51 = arith.constant 0 : index
    %c0_52 = arith.constant 0 : index
    %c0_53 = arith.constant 0 : index
    %105 = vector.load %arg9[%c0_51, %c0_52, %c0_53] : memref<2x256x128xbf16, #tpu.memory_space<vmem>>, vector<1x256x128xbf16>
    %106 = vector.shape_cast %105 : vector<1x256x128xbf16> to vector<256x128xbf16>
    %cst_54 = arith.constant dense<0.000000e+00> : vector<8x128xf32>
    %107 = tpu.matmul %104, %106, %cst_54 {dimension_numbers = #tpu.dot_dimension_numbers<[1], [0], [0], [1], [0, 0, 1, 1], [], []>} : vector<8x256xbf16>, vector<256x128xbf16>, vector<8x128xf32> -> vector<8x128xf32>
    %c0_55 = arith.constant 0 : index
    %c0_56 = arith.constant 0 : index
    %c0_57 = arith.constant 0 : index
    %108 = vector.load %arg10[%c0_55, %c0_56, %c0_57] : memref<2x1x128xf32, #tpu.memory_space<vmem>>, vector<1x1x128xf32>
    %109 = vector.shape_cast %108 : vector<1x1x128xf32> to vector<1x128xf32>
    %110 = vector.broadcast %109 : vector<1x128xf32> to vector<8x128xf32>
    %111 = arith.addf %107, %110 : vector<8x128xf32>
    %112 = arith.addf %56, %111 : vector<8x128xf32>
    %c1 = arith.constant 1 : index
    %c0_58 = arith.constant 0 : index
    %c0_59 = arith.constant 0 : index
    %113 = vector.load %arg5[%c1, %c0_58, %c0_59] : memref<2x1x128xf32, #tpu.memory_space<vmem>>, vector<1x1x128xf32>
    %114 = vector.shape_cast %113 : vector<1x1x128xf32> to vector<1x128xf32>
    %c1_60 = arith.constant 1 : index
    %c0_61 = arith.constant 0 : index
    %c0_62 = arith.constant 0 : index
    %115 = vector.load %arg6[%c1_60, %c0_61, %c0_62] : memref<2x1x128xf32, #tpu.memory_space<vmem>>, vector<1x1x128xf32>
    %116 = vector.shape_cast %115 : vector<1x1x128xf32> to vector<1x128xf32>
    %cst_63 = arith.constant dense<0.000000e+00> : vector<8xf32>
    %117 = vector.multi_reduction <add>, %112, %cst_63 [1] : vector<8x128xf32> to vector<8xf32>
    %118 = vector.shape_cast %117 : vector<8xf32> to vector<8x1xf32>
    %119 = arith.mulf %112, %112 : vector<8x128xf32>
    %cst_64 = arith.constant dense<0.000000e+00> : vector<8xf32>
    %120 = vector.multi_reduction <add>, %119, %cst_64 [1] : vector<8x128xf32> to vector<8xf32>
    %121 = vector.shape_cast %120 : vector<8xf32> to vector<8x1xf32>
    %cst_65 = arith.constant 7.812500e-03 : f32
    %122 = vector.broadcast %cst_65 : f32 to vector<8x1xf32>
    %123 = arith.mulf %118, %122 : vector<8x1xf32>
    %cst_66 = arith.constant 7.812500e-03 : f32
    %124 = vector.broadcast %cst_66 : f32 to vector<8x1xf32>
    %125 = arith.mulf %121, %124 : vector<8x1xf32>
    %126 = arith.mulf %123, %123 : vector<8x1xf32>
    %127 = arith.subf %125, %126 : vector<8x1xf32>
    %128 = vector.broadcast %123 : vector<8x1xf32> to vector<8x128xf32>
    %129 = arith.subf %112, %128 : vector<8x128xf32>
    %cst_67 = arith.constant 9.99999974E-6 : f32
    %130 = vector.broadcast %cst_67 : f32 to vector<8x1xf32>
    %131 = arith.addf %127, %130 : vector<8x1xf32>
    %132 = math.rsqrt %131 : vector<8x1xf32>
    %133 = vector.broadcast %132 : vector<8x1xf32> to vector<8x128xf32>
    %134 = arith.mulf %129, %133 : vector<8x128xf32>
    %135 = vector.broadcast %114 : vector<1x128xf32> to vector<8x128xf32>
    %136 = arith.mulf %134, %135 : vector<8x128xf32>
    %137 = vector.broadcast %116 : vector<1x128xf32> to vector<8x128xf32>
    %138 = arith.addf %136, %137 : vector<8x128xf32>
    %139 = arith.truncf %138 : vector<8x128xf32> to vector<8x128xbf16>
    %c1_68 = arith.constant 1 : index
    %c0_69 = arith.constant 0 : index
    %c0_70 = arith.constant 0 : index
    %140 = vector.load %arg2[%c1_68, %c0_69, %c0_70] : memref<2x128x128xbf16, #tpu.memory_space<vmem>>, vector<1x128x128xbf16>
    %141 = vector.shape_cast %140 : vector<1x128x128xbf16> to vector<128x128xbf16>
    %cst_71 = arith.constant dense<0.000000e+00> : vector<8x128xf32>
    %142 = tpu.matmul %139, %141, %cst_71 {dimension_numbers = #tpu.dot_dimension_numbers<[1], [0], [0], [1], [0, 0, 1, 1], [], []>} : vector<8x128xbf16>, vector<128x128xbf16>, vector<8x128xf32> -> vector<8x128xf32>
    %c1_72 = arith.constant 1 : index
    %c0_73 = arith.constant 0 : index
    %c0_74 = arith.constant 0 : index
    %143 = vector.load %arg3[%c1_72, %c0_73, %c0_74] : memref<2x128x128xbf16, #tpu.memory_space<vmem>>, vector<1x128x128xbf16>
    %144 = vector.shape_cast %143 : vector<1x128x128xbf16> to vector<128x128xbf16>
    %cst_75 = arith.constant dense<0.000000e+00> : vector<8x128xf32>
    %145 = tpu.matmul %139, %144, %cst_75 {dimension_numbers = #tpu.dot_dimension_numbers<[1], [0], [0], [1], [0, 0, 1, 1], [], []>} : vector<8x128xbf16>, vector<128x128xbf16>, vector<8x128xf32> -> vector<8x128xf32>
    %c1_76 = arith.constant 1 : index
    %c0_77 = arith.constant 0 : index
    %c0_78 = arith.constant 0 : index
    %146 = vector.load %arg4[%c1_76, %c0_77, %c0_78] : memref<2x128x128xbf16, #tpu.memory_space<vmem>>, vector<1x128x128xbf16>
    %147 = vector.shape_cast %146 : vector<1x128x128xbf16> to vector<128x128xbf16>
    %cst_79 = arith.constant dense<0.000000e+00> : vector<8x128xf32>
    %148 = tpu.matmul %139, %147, %cst_79 {dimension_numbers = #tpu.dot_dimension_numbers<[1], [0], [0], [1], [0, 0, 1, 1], [], []>} : vector<8x128xbf16>, vector<128x128xbf16>, vector<8x128xf32> -> vector<8x128xf32>
    %149 = vector.shape_cast %142 : vector<8x128xf32> to vector<1x8x128xf32>
    %150 = vector.shape_cast %145 : vector<8x128xf32> to vector<1x8x128xf32>
    %151 = vector.shape_cast %148 : vector<8x128xf32> to vector<1x8x128xf32>
    "tpu.trace_start"() <{level = 10 : i32, message = "bid,bjd->bij"}> : () -> ()
    %cst_80 = arith.constant dense<0.000000e+00> : vector<1x8x8xf32>
    %152 = tpu.matmul %149, %150, %cst_80 {dimension_numbers = #tpu.dot_dimension_numbers<[2], [2], [1], [1], [0, 0, 0, 1, 1, 1], [0], [0]>} : vector<1x8x128xf32>, vector<1x8x128xf32>, vector<1x8x8xf32> -> vector<1x8x8xf32>
    "tpu.trace_stop"() : () -> ()
    %cst_81 = arith.constant 0.0883883461 : f32
    %153 = vector.broadcast %cst_81 : f32 to vector<1x8x8xf32>
    %154 = arith.mulf %152, %153 : vector<1x8x8xf32>
    %cst_82 = arith.constant dense<0xFF800000> : vector<1x8xf32>
    %155 = vector.multi_reduction <maximumf>, %154, %cst_82 [2] : vector<1x8x8xf32> to vector<1x8xf32>
    %156 = vector.shape_cast %155 : vector<1x8xf32> to vector<1x8x1xf32>
    %157 = vector.broadcast %156 : vector<1x8x1xf32> to vector<1x8x8xf32>
    %158 = arith.subf %154, %157 : vector<1x8x8xf32>
    %159 = math.exp %158 : vector<1x8x8xf32>
    %cst_83 = arith.constant dense<0.000000e+00> : vector<1x8xf32>
    %160 = vector.multi_reduction <add>, %159, %cst_83 [2] : vector<1x8x8xf32> to vector<1x8xf32>
    %161 = vector.shape_cast %160 : vector<1x8xf32> to vector<1x8x1xf32>
    %162 = tpu.reciprocal %161 {approx = true} : vector<1x8x1xf32> -> vector<1x8x1xf32>
    %163 = vector.broadcast %162 : vector<1x8x1xf32> to vector<1x8x8xf32>
    %164 = arith.mulf %159, %163 : vector<1x8x8xf32>
    "tpu.trace_start"() <{level = 10 : i32, message = "bij,bjd->bid"}> : () -> ()
    %cst_84 = arith.constant dense<0.000000e+00> : vector<1x8x128xf32>
    %165 = tpu.matmul %164, %151, %cst_84 {dimension_numbers = #tpu.dot_dimension_numbers<[2], [1], [1], [2], [0, 0, 0, 1, 1, 2], [0], [0]>} : vector<1x8x8xf32>, vector<1x8x128xf32>, vector<1x8x128xf32> -> vector<1x8x128xf32>
    "tpu.trace_stop"() : () -> ()
    %166 = vector.shape_cast %165 : vector<1x8x128xf32> to vector<8x128xf32>
    %167 = arith.addf %112, %166 : vector<8x128xf32>
    %c1_85 = arith.constant 1 : index
    %c0_86 = arith.constant 0 : index
    %c0_87 = arith.constant 0 : index
    %168 = vector.load %arg11[%c1_85, %c0_86, %c0_87] : memref<2x1x128xf32, #tpu.memory_space<vmem>>, vector<1x1x128xf32>
    %169 = vector.shape_cast %168 : vector<1x1x128xf32> to vector<1x128xf32>
    %c1_88 = arith.constant 1 : index
    %c0_89 = arith.constant 0 : index
    %c0_90 = arith.constant 0 : index
    %170 = vector.load %arg12[%c1_88, %c0_89, %c0_90] : memref<2x1x128xf32, #tpu.memory_space<vmem>>, vector<1x1x128xf32>
    %171 = vector.shape_cast %170 : vector<1x1x128xf32> to vector<1x128xf32>
    %cst_91 = arith.constant dense<0.000000e+00> : vector<8xf32>
    %172 = vector.multi_reduction <add>, %167, %cst_91 [1] : vector<8x128xf32> to vector<8xf32>
    %173 = vector.shape_cast %172 : vector<8xf32> to vector<8x1xf32>
    %174 = arith.mulf %167, %167 : vector<8x128xf32>
    %cst_92 = arith.constant dense<0.000000e+00> : vector<8xf32>
    %175 = vector.multi_reduction <add>, %174, %cst_92 [1] : vector<8x128xf32> to vector<8xf32>
    %176 = vector.shape_cast %175 : vector<8xf32> to vector<8x1xf32>
    %cst_93 = arith.constant 7.812500e-03 : f32
    %177 = vector.broadcast %cst_93 : f32 to vector<8x1xf32>
    %178 = arith.mulf %173, %177 : vector<8x1xf32>
    %cst_94 = arith.constant 7.812500e-03 : f32
    %179 = vector.broadcast %cst_94 : f32 to vector<8x1xf32>
    %180 = arith.mulf %176, %179 : vector<8x1xf32>
    %181 = arith.mulf %178, %178 : vector<8x1xf32>
    %182 = arith.subf %180, %181 : vector<8x1xf32>
    %183 = vector.broadcast %178 : vector<8x1xf32> to vector<8x128xf32>
    %184 = arith.subf %167, %183 : vector<8x128xf32>
    %cst_95 = arith.constant 9.99999974E-6 : f32
    %185 = vector.broadcast %cst_95 : f32 to vector<8x1xf32>
    %186 = arith.addf %182, %185 : vector<8x1xf32>
    %187 = math.rsqrt %186 : vector<8x1xf32>
    %188 = vector.broadcast %187 : vector<8x1xf32> to vector<8x128xf32>
    %189 = arith.mulf %184, %188 : vector<8x128xf32>
    %190 = vector.broadcast %169 : vector<1x128xf32> to vector<8x128xf32>
    %191 = arith.mulf %189, %190 : vector<8x128xf32>
    %192 = vector.broadcast %171 : vector<1x128xf32> to vector<8x128xf32>
    %193 = arith.addf %191, %192 : vector<8x128xf32>
    %194 = arith.truncf %193 : vector<8x128xf32> to vector<8x128xbf16>
    %c1_96 = arith.constant 1 : index
    %c0_97 = arith.constant 0 : index
    %c0_98 = arith.constant 0 : index
    %195 = vector.load %arg7[%c1_96, %c0_97, %c0_98] : memref<2x128x256xbf16, #tpu.memory_space<vmem>>, vector<1x128x256xbf16>
    %196 = vector.shape_cast %195 : vector<1x128x256xbf16> to vector<128x256xbf16>
    %cst_99 = arith.constant dense<0.000000e+00> : vector<8x256xf32>
    %197 = tpu.matmul %194, %196, %cst_99 {dimension_numbers = #tpu.dot_dimension_numbers<[1], [0], [0], [1], [0, 0, 1, 1], [], []>} : vector<8x128xbf16>, vector<128x256xbf16>, vector<8x256xf32> -> vector<8x256xf32>
    %c1_100 = arith.constant 1 : index
    %c0_101 = arith.constant 0 : index
    %c0_102 = arith.constant 0 : index
    %198 = vector.load %arg8[%c1_100, %c0_101, %c0_102] : memref<2x1x256xf32, #tpu.memory_space<vmem>>, vector<1x1x256xf32>
    %199 = vector.shape_cast %198 : vector<1x1x256xf32> to vector<1x256xf32>
    %200 = vector.broadcast %199 : vector<1x256xf32> to vector<8x256xf32>
    %201 = arith.addf %197, %200 : vector<8x256xf32>
    %cst_103 = arith.constant 5.000000e-01 : f32
    %202 = vector.broadcast %cst_103 : f32 to vector<8x256xf32>
    %203 = arith.mulf %202, %201 : vector<8x256xf32>
    %cst_104 = arith.constant 4.471500e-02 : f32
    %204 = vector.broadcast %cst_104 : f32 to vector<8x256xf32>
    %205 = arith.mulf %204, %201 : vector<8x256xf32>
    %206 = arith.mulf %205, %201 : vector<8x256xf32>
    %207 = arith.mulf %206, %201 : vector<8x256xf32>
    %208 = arith.addf %201, %207 : vector<8x256xf32>
    %cst_105 = arith.constant 0.797884583 : f32
    %209 = vector.broadcast %cst_105 : f32 to vector<8x256xf32>
    %210 = arith.mulf %209, %208 : vector<8x256xf32>
    %211 = math.tanh %210 : vector<8x256xf32>
    %cst_106 = arith.constant 1.000000e+00 : f32
    %212 = vector.broadcast %cst_106 : f32 to vector<8x256xf32>
    %213 = arith.addf %212, %211 : vector<8x256xf32>
    %214 = arith.mulf %203, %213 : vector<8x256xf32>
    %215 = arith.truncf %214 : vector<8x256xf32> to vector<8x256xbf16>
    %c1_107 = arith.constant 1 : index
    %c0_108 = arith.constant 0 : index
    %c0_109 = arith.constant 0 : index
    %216 = vector.load %arg9[%c1_107, %c0_108, %c0_109] : memref<2x256x128xbf16, #tpu.memory_space<vmem>>, vector<1x256x128xbf16>
    %217 = vector.shape_cast %216 : vector<1x256x128xbf16> to vector<256x128xbf16>
    %cst_110 = arith.constant dense<0.000000e+00> : vector<8x128xf32>
    %218 = tpu.matmul %215, %217, %cst_110 {dimension_numbers = #tpu.dot_dimension_numbers<[1], [0], [0], [1], [0, 0, 1, 1], [], []>} : vector<8x256xbf16>, vector<256x128xbf16>, vector<8x128xf32> -> vector<8x128xf32>
    %c1_111 = arith.constant 1 : index
    %c0_112 = arith.constant 0 : index
    %c0_113 = arith.constant 0 : index
    %219 = vector.load %arg10[%c1_111, %c0_112, %c0_113] : memref<2x1x128xf32, #tpu.memory_space<vmem>>, vector<1x1x128xf32>
    %220 = vector.shape_cast %219 : vector<1x1x128xf32> to vector<1x128xf32>
    %221 = vector.broadcast %220 : vector<1x128xf32> to vector<8x128xf32>
    %222 = arith.addf %218, %221 : vector<8x128xf32>
    %223 = arith.addf %167, %222 : vector<8x128xf32>
    %c0_114 = arith.constant 0 : index
    %c0_115 = arith.constant 0 : index
    %224 = vector.load %arg13[%c0_114, %c0_115] : memref<1x128xf32, #tpu.memory_space<vmem>>, vector<1x128xf32>
    %cst_116 = arith.constant dense<0.000000e+00> : vector<1x8xf32>
    %225 = tpu.matmul %224, %223, %cst_116 {dimension_numbers = #tpu.dot_dimension_numbers<[1], [1], [0], [0], [0, 0, 1, 0], [], []>} : vector<1x128xf32>, vector<8x128xf32>, vector<1x8xf32> -> vector<1x8xf32>
    %c0_117 = arith.constant 0 : index
    %c0_118 = arith.constant 0 : index
    %226 = vector.load %arg14[%c0_117, %c0_118] : memref<1x1xf32, #tpu.memory_space<vmem>>, vector<1x1xf32>
    %227 = vector.broadcast %226 : vector<1x1xf32> to vector<1x8xf32>
    %228 = arith.addf %225, %227 : vector<1x8xf32>
    %c0_119 = arith.constant 0 : index
    %c0_120 = arith.constant 0 : index
    %c0_121 = arith.constant 0 : index
    %229 = vector.load %arg15[%c0_119, %c0_120, %c0_121] : memref<1x1x8xf32, #tpu.memory_space<vmem>>, vector<1x1x8xf32>
    %230 = vector.shape_cast %229 : vector<1x1x8xf32> to vector<1x8xf32>
    %231 = vector.shape_cast %228 : vector<1x8xf32> to vector<1x1x8xf32>
    tpu.vector_store %arg15[%c0_119, %c0_120, %c0_121], %231 {strides = array<i32>} : memref<1x1x8xf32, #tpu.memory_space<vmem>>, vector<1x1x8xf32>,
    return
  }
  func.func @transform_0(%arg0: i32) -> (i32, i32, i32) {
    %c0_i32 = arith.constant 0 : i32
    %c0_i32_0 = arith.constant 0 : i32
    %c0_i32_1 = arith.constant 0 : i32
    return %arg0, %c0_i32, %c0_i32_0 : i32, i32, i32
  }
  func.func @transform_1(%arg0: i32) -> (i32, i32, i32) {
    %c0_i32 = arith.constant 0 : i32
    %c0_i32_0 = arith.constant 0 : i32
    %c0_i32_1 = arith.constant 0 : i32
    %c0_i32_2 = arith.constant 0 : i32
    return %c0_i32, %c0_i32_0, %c0_i32_1 : i32, i32, i32
  }
  func.func @transform_2(%arg0: i32) -> (i32, i32, i32) {
    %c0_i32 = arith.constant 0 : i32
    %c0_i32_0 = arith.constant 0 : i32
    %c0_i32_1 = arith.constant 0 : i32
    %c0_i32_2 = arith.constant 0 : i32
    return %c0_i32, %c0_i32_0, %c0_i32_1 : i32, i32, i32
  }
  func.func @transform_3(%arg0: i32) -> (i32, i32, i32) {
    %c0_i32 = arith.constant 0 : i32
    %c0_i32_0 = arith.constant 0 : i32
    %c0_i32_1 = arith.constant 0 : i32
    %c0_i32_2 = arith.constant 0 : i32
    return %c0_i32, %c0_i32_0, %c0_i32_1 : i32, i32, i32
  }
  func.func @transform_4(%arg0: i32) -> (i32, i32, i32) {
    %c0_i32 = arith.constant 0 : i32
    %c0_i32_0 = arith.constant 0 : i32
    %c0_i32_1 = arith.constant 0 : i32
    %c0_i32_2 = arith.constant 0 : i32
    return %c0_i32, %c0_i32_0, %c0_i32_1 : i32, i32, i32
  }
  func.func @transform_5(%arg0: i32) -> (i32, i32, i32) {
    %c0_i32 = arith.constant 0 : i32
    %c0_i32_0 = arith.constant 0 : i32
    %c0_i32_1 = arith.constant 0 : i32
    %c0_i32_2 = arith.constant 0 : i32
    return %c0_i32, %c0_i32_0, %c0_i32_1 : i32, i32, i32
  }
  func.func @transform_6(%arg0: i32) -> (i32, i32, i32) {
    %c0_i32 = arith.constant 0 : i32
    %c0_i32_0 = arith.constant 0 : i32
    %c0_i32_1 = arith.constant 0 : i32
    %c0_i32_2 = arith.constant 0 : i32
    return %c0_i32, %c0_i32_0, %c0_i32_1 : i32, i32, i32
  }
  func.func @transform_7(%arg0: i32) -> (i32, i32, i32) {
    %c0_i32 = arith.constant 0 : i32
    %c0_i32_0 = arith.constant 0 : i32
    %c0_i32_1 = arith.constant 0 : i32
    %c0_i32_2 = arith.constant 0 : i32
    return %c0_i32, %c0_i32_0, %c0_i32_1 : i32, i32, i32
  }
  func.func @transform_8(%arg0: i32) -> (i32, i32, i32) {
    %c0_i32 = arith.constant 0 : i32
    %c0_i32_0 = arith.constant 0 : i32
    %c0_i32_1 = arith.constant 0 : i32
    %c0_i32_2 = arith.constant 0 : i32
    return %c0_i32, %c0_i32_0, %c0_i32_1 : i32, i32, i32
  }
  func.func @transform_9(%arg0: i32) -> (i32, i32, i32) {
    %c0_i32 = arith.constant 0 : i32
    %c0_i32_0 = arith.constant 0 : i32
    %c0_i32_1 = arith.constant 0 : i32
    %c0_i32_2 = arith.constant 0 : i32
    return %c0_i32, %c0_i32_0, %c0_i32_1 : i32, i32, i32
  }
  func.func @transform_10(%arg0: i32) -> (i32, i32, i32) {
    %c0_i32 = arith.constant 0 : i32
    %c0_i32_0 = arith.constant 0 : i32
    %c0_i32_1 = arith.constant 0 : i32
    %c0_i32_2 = arith.constant 0 : i32
    return %c0_i32, %c0_i32_0, %c0_i32_1 : i32, i32, i32
  }
  func.func @transform_11(%arg0: i32) -> (i32, i32, i32) {
    %c0_i32 = arith.constant 0 : i32
    %c0_i32_0 = arith.constant 0 : i32
    %c0_i32_1 = arith.constant 0 : i32
    %c0_i32_2 = arith.constant 0 : i32
    return %c0_i32, %c0_i32_0, %c0_i32_1 : i32, i32, i32
  }
  func.func @transform_12(%arg0: i32) -> (i32, i32) {
    %c0_i32 = arith.constant 0 : i32
    %c0_i32_0 = arith.constant 0 : i32
    %c0_i32_1 = arith.constant 0 : i32
    return %c0_i32, %c0_i32_0 : i32, i32
  }
  func.func @transform_13(%arg0: i32) -> (i32, i32) {
    %c0_i32 = arith.constant 0 : i32
    %c0_i32_0 = arith.constant 0 : i32
    %c0_i32_1 = arith.constant 0 : i32
    return %c0_i32, %c0_i32_0 : i32, i32
  }
  func.func @transform_14(%arg0: i32) -> (i32, i32, i32) {
    %c0_i32 = arith.constant 0 : i32
    %c0_i32_0 = arith.constant 0 : i32
    %c0_i32_1 = arith.constant 0 : i32
    return %arg0, %c0_i32, %c0_i32_0 : i32, i32, i32
  }
}

</mosaic_0001>

<bundles_post_ra>
// kernel: tpu_custom_call.1
= control target key start
LH: loop header
LB: loop body
LE: loop exit
PB: predicated region body
PF: predicated region fallthrough
CT: control target
= control target key end

     0   :  { %s3463_s0 = inlined_call_operand.hbm [shape: f32[2,8,128], index: 0, kind: input, shape index: {}]   ;;  %s3464_s1 = inlined_call_operand.hbm [shape: bf16[2,128,128], index: 1, kind: input, shape index: {}]   ;;  %s3465_s2 = inlined_call_operand.hbm [shape: bf16[2,128,128], index: 2, kind: input, shape index: {}]   ;;  %s3466_s3 = inlined_call_operand.hbm [shape: bf16[2,128,128], index: 3, kind: input, shape index: {}]   ;;  %s3467_s4 = inlined_call_operand.vmem [shape: f32[2,1,128], index: 4, kind: input, shape index: {}]   ;;  %s3468_s5 = inlined_call_operand.hbm [shape: f32[2,1,128], index: 5, kind: input, shape index: {}]   ;;  %s3469_s6 = inlined_call_operand.hbm [shape: bf16[2,128,256], index: 6, kind: input, shape index: {}]   ;;  %s3470_s7 = inlined_call_operand.vmem [shape: f32[2,1,256], index: 7, kind: input, shape index: {}]   ;;  %s3471_s8 = inlined_call_operand.hbm [shape: bf16[2,256,128], index: 8, kind: input, shape index: {}]   ;;  %s3472_s9 = inlined_call_operand.vmem [shape: f32[2,1,128], index: 9, kind: input, shape index: {}]   ;;  %s3473_s10 = inlined_call_operand.vmem [shape: f32[2,1,128], index: 10, kind: input, shape index: {}]   ;;  %s3474_s11 = inlined_call_operand.vmem [shape: f32[2,1,128], index: 11, kind: input, shape index: {}]   ;;  %s3475_s12 = inlined_call_operand.vmem [shape: f32[1,128], index: 12, kind: input, shape index: {}]   ;;  %s3476_s13 = inlined_call_operand.<no memory space> [shape: f32[1,1], index: 13, kind: input, shape index: {}]   ;;  %s3477_s14 = inlined_call_operand.hbm [shape: f32[2,1,8], index: 14, kind: output, shape index: {}]  }
   0x1   :  { %3480 = sst [smem:[#allocation21_spill]] %s3464_s1  ;;  %v19_v0 = vstv %s3476_s13 }
   0x2   :  { %3481 = sst [smem:[#allocation22_spill]] %s3465_s2  ;;  %20 = vst [vmem:[#allocation2] sm:$0x1] %v19_v0 }
   0x3   :  { %3482 = sst [smem:[#allocation23_spill]] %s3466_s3 }
   0x4   :  { %3483 = sst [smem:[#allocation24_spill]] %s3468_s5 }
   0x5   :  { %3484 = sst [smem:[#allocation25_spill]] %s3469_s6 }
   0x6   :  { %3485 = sst [smem:[#allocation26_spill]] %s3472_s9 }
   0x7   :  { %3486 = sst [smem:[#allocation27_spill]] %s3475_s12 }
   0x8   :  { %3487 = sst [smem:[#allocation28_spill]] %s3477_s14 }
   0x9   :  { %21 = vsyncpa [#allocation4], 0 }
   0xa   :  { %23 = vsyncpa [#allocation4 + $0x1], 0 }
   0xb   :  { %24 = vsyncpa [#allocation7], 0 }
   0xc   :  { %25 = vsyncpa [#allocation10], 0 }
   0xd   :  { %26 = vsyncpa [#allocation13], 0 }
   0xe   :  { %27 = vsyncpa [#allocation5], 0 }
   0xf   :  { %29 = vsyncpa [#allocation5 + $0x1], 0  ;;  %s3202_s15 = smov 0   ;;  %s3204_s16 = smov 0  }
  0x10   :  { %s3206_s17 = smov 0   ;;  %s3208_s18 = smov 0  }
  0x11 LB: > { %s3488_s1 = sld [smem:[#allocation21_spill]]  ;;  %s3226_s21 = sadd.s32 4294967295, %s3109_s18   ;;  %s3109_s18 = sphi %s3208_s18, %s3507_s18   ;;  %s3105_s17 = sphi %s3206_s17, %s3506_s17   ;;  %s3101_s16 = sphi %s3204_s16, %s3505_s16   ;;  %s3097_s15 = sphi %s3202_s15, %s3504_s15  }
  0x12   : > { %p2085_p0 = scmp.ge.s32.totalorder %s3109_s18, 1  ;;  %p56_p1 = scmp.eq.s32.totalorder %s3226_s21, 0 }
  0x13   : > { %p365_p2 = scmp.lt.s32.totalorder %s3109_s18, 3  ;;  %s3111_s23 = smov [#allocation6]  }
  0x14   : > { %s378_s24 = sshll.u32 %s3111_s23, 4  ;;  %s3490_s3 = sld [smem:[#allocation23_spill]]  ;;  %s379_s24 = int_to_ptr.vmem [resolvable:$true] %s378_s24 }
  0x15   : > { %p3231_p3 = pnand %p2085_p0, %p365_p2  ;;  %s3492_s6 = sld [smem:[#allocation25_spill]] }
  0x16   : > { %s3112_s19 = smov [#allocation9]   ;;  %s3114_s14 = smov 4  }
  0x17   : > { %s376_s20 = sshll.u32 %s3488_s1, 4  ;;  %p2700_p4 = pneg %p3231_p3  ;;  %s377_s20 = int_to_ptr.hbm [resolvable:$true] %s376_s20 }
  0x18   : > { %s406_s23 = sshll.u32 %s3112_s19, 4  ;;  %s3113_s1 = smov 64   ;;  %s407_s23 = int_to_ptr.vmem [resolvable:$true] %s406_s23 }
  0x19   : > { %p3243_p6 = pnand %p2700_p4, %p56_p1  ;;  %s3115_s25 = smov [#allocation12]  }
  0x1a   : > { %s404_s27 = sshll.u32 %s3490_s3, 4  ;;  %s437_s26 = sshll.u32 %s3115_s25, 4  ;;  %s405_s27 = int_to_ptr.hbm [resolvable:$true] %s404_s27  ;;  %s438_s26 = int_to_ptr.vmem [resolvable:$true] %s437_s26 }
  0x1b   : > { %s435_s13 = sshll.u32 %s3492_s6, 4  ;;  %s3493_s2 = sld [smem:[#allocation22_spill]]  ;;  %s436_s13 = int_to_ptr.hbm [resolvable:$true] %s435_s13 }
  0x1c   : > { %2703 = dma.hbm_to_vmem [thread:$0]  (!%p3243_p6), %s377_s20, 2048, %s379_s24, [#allocation7], %s3113_s1, %s3113_s1, %s3114_s14  }
  0x1d   : > { %2709 = dma.hbm_to_vmem [thread:$0]  (!%p3243_p6), %s405_s27, 2048, %s407_s23, [#allocation10], %s3113_s1, %s3113_s1, %s3114_s14  }
  0x1e   : > { %s3116_s3 = smov 128   ;;  %s3117_s6 = smov 8  }
  0x1f   : > { %2715 = dma.hbm_to_vmem [thread:$0]  (!%p3243_p6), %s436_s13, 4096, %s438_s26, [#allocation13], %s3116_s3, %s3116_s3, %s3117_s6  }
  0x20   : > { %s3118_s20 = smov [#allocation8]   ;;  %s3494_s5 = sld [smem:[#allocation24_spill]] }
  0x21   : > { %s390_s19 = sshll.u32 %s3493_s2, 4  ;;  %s392_s24 = sshll.u32 %s3118_s20, 4  ;;  %s391_s19 = int_to_ptr.hbm [resolvable:$true] %s390_s19  ;;  %s393_s24 = int_to_ptr.vmem [resolvable:$true] %s392_s24 }
  0x22   : > { %2706 = dma.hbm_to_vmem [thread:$0]  (!%p3243_p6), %s391_s19, 2048, %s393_s24, [#allocation7], %s3113_s1, %s3113_s1, %s3114_s14  }
  0x23   : > { %s3119_s3 = smov [#allocation11]   ;;  %s452_s12 = sshll.u32 %s3471_s8, 4  ;;  %s453_s12 = int_to_ptr.hbm [resolvable:$true] %s452_s12 }
  0x24   : > { %s423_s6 = sshll.u32 %s3119_s3, 4  ;;  %s3120_s23 = smov 16   ;;  %s424_s6 = int_to_ptr.vmem [resolvable:$true] %s423_s6 }
  0x25   : > { %s3121_s25 = smov 1   ;;  %s3122_s26 = smov [#allocation14]  }
  0x26   : > { %s421_s27 = sshll.u32 %s3494_s5, 4  ;;  %s454_s29 = sshll.u32 %s3122_s26, 4  ;;  %s422_s27 = int_to_ptr.hbm [resolvable:$true] %s421_s27  ;;  %s455_s29 = int_to_ptr.vmem [resolvable:$true] %s454_s29 }
  0x27   : > { %2712 = dma.hbm_to_vmem [thread:$0]  (!%p3243_p6), %s422_s27, 32, %s424_s6, [#allocation10], %s3120_s23, %s3120_s23, %s3121_s25  }
  0x28   : > { %2718 = dma.hbm_to_vmem [thread:$0]  (!%p3243_p6), %s453_s12, 4096, %s455_s29, [#allocation13], %s3113_s1, %s3113_s1, %s3114_s14  }
  0x29   : > { %s2084_s30 = sadd.s32 4294967294, %s3109_s18   ;;  %s3285_s19 = sadd.s32 1, %s3109_s18  }
  0x2a   : > { %s39_s20 = ssub.s32 %s3109_s18, %s3285_s19  ;;  %s42_s24 = sadd.s32 1, %s3105_s17 }
  0x2b   : > { %p40_p7 = scmp.eq.s32.totalorder %s39_s20, 0  ;;  %p49_p8 = scmp.ne.s32.totalorder %s3105_s17, %s3101_s16 }
  0x2c   : > { %p50_p9 = scmp.eq.s32.totalorder %s3109_s18, 0  ;;  %p55_p10 = scmp.ne.s32.totalorder %s3101_s16, %s3097_s15 }
  0x2d   : > { %s3296_s27 = scalar_select %p40_p7, %s3105_s17, %s42_s24  }
  0x2e   : > { %p3298_p11 = por %p50_p9, %p49_p8  ;;  %p3304_p12 = por %p56_p1, %p55_p10 }
  0x2f   : > { %p352_p13 = scmp.eq.s32.totalorder %s3226_s21, 1  ;;  %p358_p0 = scmp.eq.s32.totalorder %s2084_s30, 1 }
  0x30   : > { %p2733_p2 = scmp.lt.s32.totalorder %s3109_s18, 2  ;;  %s483_s14 = sand.u32 1, %s3105_s17  }
  0x31   : > { %p3311_p4 = por %p352_p13, %p49_p8  ;;  %p3315_p6 = por %p358_p0, %p55_p10 }
  0x32   : > { %s2093_s13 = sshll.u32 %s483_s14, 3  ;;  %s2094_s9 = sshll.u32 %s3109_s18, 3 }
  0x33   : > { %s491_s25 = scalar_lea.hbm %s3463_s0, %s2094_s9  ;;  %s487_s26 = scalar_lea.vmem [#allocation3], %s2093_s13 }
  0x34   : > { %s495_s29 = sshll.u32 %s487_s26, 4  ;;  %s493_s20 = sshll.u32 %s491_s25, 4  ;;  %s496_s29 = int_to_ptr.vmem [resolvable:$true] %s495_s29  ;;  %s494_s20 = int_to_ptr.hbm [resolvable:$true] %s493_s20 }
  0x35   : > { %p3325_p7 = pnand %p2733_p2, %p3298_p11  ;;  %s484_s24 = scalar_lea.sflag [#allocation4], %s483_s14 }
  0x36   : > { %s3001_s2 = sshra.s32 %s494_s20, 4  ;;  %s3008_s12 = scalar_lea.hbm %s3463_s0, 16  ;;  %s3002_s2 = int_to_ptr.hbm [resolvable:$true] %s3001_s2 }
  0x37   : > { %s3003_s5 = scalar_lea.hbm %s3002_s2, 8  ;;  %p3005_p9 = pneg %p3325_p7 }
  0x38   : > { %p3004_p8 = scmp.ne.s32.totalorder %s3002_s2, %s3003_s5  ;;  %p3009_p11 = scmp.lt.s32.totalorder %s3002_s2, %s3463_s0 }
  0x39   : > { %p3010_p0 = scmp.lt.s32.totalorder %s3008_s12, %s3003_s5 }
  0x3a   : > { %p3006_p10 = pnand %p3005_p9, %p3004_p8 }
  0x3b   : > { %p3011_p2 = por %p3010_p0, %p3009_p11 }
  0x3c   : > { %p3007_p13 = pneg %p3006_p10 }
  0x3e   : > { %p3012_p5 = pnand %p3011_p2, %p3007_p13 }
  0x40   : > { %3015 = shalt.err (!%p3012_p5)
}
  0x41   : > { %2722 = dma.hbm_to_vmem [thread:$0]  (!%p3325_p7), %s494_s20, 128, %s496_s29, %s484_s24  }
  0x42   : > { %504 = sbr.rel (%p3231_p3) target bundleno = 2714 (0xa9a), region = 76  ;;  %s3342_s14 = sand.u32 (!%p3231_p3), 1, %s3101_s16  }
  0x43   : > { %s2096_s25 = sshll.u32 (!%p3231_p3), %s3342_s14, 3  ;;  %s507_s26 = scalar_lea.sflag (!%p3231_p3), [#allocation4], %s3342_s14 }
  0x44   : > { %s510_s13 = scalar_lea.vmem (!%p3231_p3), [#allocation3], %s2096_s25 }
  0x47   : > { %3076 = dma.done.wait (%p3304_p12), %s507_s26, 128  }
  0x48   : > { %3078 = vsyncadd (%p3304_p12), %s507_s26, 4294967168 }
  0x49   : > { %3080 = dma.done.wait (%p56_p1), [#allocation7], 4096  }
  0x4a   : > { %3082 = vsyncadd (%p56_p1), [#allocation7], 4294963200 }
  0x4b   : > { %3084 = dma.done.wait (%p56_p1), [#allocation10], 2080  }
  0x4c   : > { %3086 = vsyncadd (%p56_p1), [#allocation10], 4294965216 }
  0x4d   : > { %3088 = dma.done.wait (%p56_p1), [#allocation13], 8192  }
  0x4e   : > { %3090 = vsyncadd (%p56_p1), [#allocation13], 4294959104  ;;  %v3362_v1 = vld [vmem:[%s510_s13] sm:$0xff]  ;;  %v2565_v9 = vld [vmem:[#allocation6 + $0x28] sm:$0xff]  ;;  %vm871_vm3 = vcmask 64512   ;;  %s3500_s23 = sld [smem:[#allocation26_spill]] }
  0x4f   : > { %588 = vadd.xlane.f32.xlu0 %v3362_v1  ;;  %v590_v2 = vmul.f32 %v3362_v1, %v3362_v1  ;;  %v2567_v3 = vld [vmem:[#allocation6 + $0x38] sm:$0xff]  ;;  %v2566_v6 = vld [vmem:[#allocation6 + $0x30] sm:$0xff]  ;;  %v2573_v10 = vld [vmem:[#allocation8 + $0x28] sm:$0xff]  ;;  %s3501_s9 = sld [smem:[#allocation27_spill]]  ;;  %s584_s13 = scalar_lea.vmem [#allocation15], %s3342_s14  ;;  %vm1946_vm13 = vcmask 57344  }
  0x50   : > { %v2575_v4 = vld [vmem:[#allocation8 + $0x38] sm:$0xff]  ;;  %683 = vmatpush.bf16.msra.mxu0 %v2567_v3  ;;  %v2574_v7 = vld [vmem:[#allocation8 + $0x30] sm:$0xff]  ;;  %v2581_v11 = vld [vmem:[#allocation9 + $0x28] sm:$0xff]  ;;  %s3502_s25 = sld [smem:[#allocation28_spill]]  ;;  %s1959_s2 = sshll.u32 %s584_s13, 4  ;;  %s1960_s2 = int_to_ptr.vmem [resolvable:$true] %s1959_s2 }
  0x51   : > { %v2583_v5 = vld [vmem:[#allocation9 + $0x38] sm:$0xff]  ;;  %760 = vmatpush.bf16.msra.mxu1 %v2575_v4  ;;  %v2582_v8 = vld [vmem:[#allocation9 + $0x30] sm:$0xff]  ;;  %v2564_v12 = vld [vmem:[#allocation6 + $0x20] sm:$0xff]  ;;  %s1949_s22 = scalar_lea.sflag [#allocation5], %s3342_s14 }
  0x52   : > { %837 = vmatpush.bf16.msra.mxu2 %v2583_v5  ;;  %v2572_v13 = vld [vmem:[#allocation8 + $0x20] sm:$0xff]  ;;  %v2563_v15 = vld [vmem:[#allocation6 + $0x18] sm:$0xff]  ;;  %v2562_v18 = vld [vmem:[#allocation6 + $0x10] sm:$0xff] }
  0x53   : > { %v2580_v14 = vld [vmem:[#allocation9 + $0x20] sm:$0xff]  ;;  %v2571_v16 = vld [vmem:[#allocation8 + $0x18] sm:$0xff]  ;;  %v2570_v19 = vld [vmem:[#allocation8 + $0x10] sm:$0xff] }
  0x54   : > { %684 = vmatpush.bf16.msra.mxu0 %v2566_v6  ;;  %v2579_v17 = vld [vmem:[#allocation9 + $0x18] sm:$0xff]  ;;  %v2578_v20 = vld [vmem:[#allocation9 + $0x10] sm:$0xff]  ;;  %v2561_v21 = vld [vmem:[#allocation6 + $0x8] sm:$0xff] }
  0x55   : > { %761 = vmatpush.bf16.msra.mxu1 %v2574_v7  ;;  %v2569_v22 = vld [vmem:[#allocation8 + $0x8] sm:$0xff]  ;;  %v2560_v25 = vld [vmem:[#allocation6] sm:$0xff]  ;;  %v2258_v5 = vld [vmem:[#allocation12 + $0x70] sm:$0xf] }
  0x56   : > { %838 = vmatpush.bf16.msra.mxu2 %v2582_v8  ;;  %v2577_v23 = vld [vmem:[#allocation9 + $0x8] sm:$0xff]  ;;  %v2568_v26 = vld [vmem:[#allocation8] sm:$0xff]  ;;  %v2599_v6 = vld [vmem:[#allocation12 + $0x74] sm:$0xf0]  ;;  %s1957_s26 = scalar_lea.hbm %s3502_s25, %s3226_s21  ;;  %s3051_s30 = scalar_lea.hbm %s3502_s25, 2 }
  0x57   : > { %591 = vadd.xlane.f32.xlu0 %v590_v2  ;;  %v2576_v27 = vld [vmem:[#allocation9] sm:$0xff]  ;;  %v2787_v41 = vld [vmem:[%s3467_s4] ss:$0 sm:$0xff]  ;;  %v2598_v7 = vld [vmem:[#allocation12 + $0x74] sm:$0xf]  ;;  %v2259_v8 = vor.u32 %v2599_v6, %v2258_v5  ;;  %s1961_s5 = sshll.u32 %s1957_s26, 4  ;;  %s1962_s5 = int_to_ptr.hbm [resolvable:$true] %s1961_s5 }
  0x58   : > { %685 = vmatpush.bf16.msra.mxu0 %v2565_v9  ;;  %v2788_v44 = vld [vmem:[#allocation11] ss:$0 sm:$0xff]  ;;  %v2789_v6 = vld [vmem:[%s3473_s10] ss:$0 sm:$0xff]  ;;  %s3045_s1 = sshra.s32 %s1962_s5, 4  ;;  %s3046_s1 = int_to_ptr.hbm [resolvable:$true] %s3045_s1 }
  0x59   : > { %762 = vmatpush.bf16.msra.mxu1 %v2573_v10  ;;  %v2260_v9 = vld [vmem:[#allocation12 + $0x78] sm:$0xf0]  ;;  %s3047_s29 = scalar_lea.hbm %s3046_s1, 1  ;;  %p3052_p12 = scmp.lt.s32.totalorder %s3046_s1, %s3502_s25 }
  0x5a   : > { %839 = vmatpush.bf16.msra.mxu2 %v2581_v11  ;;  %v2263_v10 = vor.u32 %v2598_v7, %v2260_v9  ;;  %v2250_v11 = vld [vmem:[#allocation12 + $0x60] sm:$0xf]  ;;  %v2790_v9 = vld [vmem:[%s3474_s11] ss:$0 sm:$0xff]  ;;  %p3048_p1 = scmp.ne.s32.totalorder %s3046_s1, %s3047_s29  ;;  %p3053_p7 = scmp.lt.s32.totalorder %s3051_s30, %s3047_s29 }
  0x5c   : > { %686 = vmatpush.bf16.msra.mxu0 %v2564_v12  ;;  %v2597_v12 = vld [vmem:[#allocation12 + $0x64] sm:$0xf0]  ;;  %p3049_p3 = pnand %p3048_p1, %p3311_p4  ;;  %p3054_p8 = por %p3053_p7, %p3052_p12 }
  0x5d   : > { %763 = vmatpush.bf16.msra.mxu1 %v2572_v13  ;;  %v2596_v13 = vld [vmem:[#allocation12 + $0x64] sm:$0xf] }
  0x5e   : > { %840 = vmatpush.bf16.msra.mxu2 %v2580_v14  ;;  %v2251_v14 = vor.u32 %v2597_v12, %v2250_v11  ;;  %p3050_p5 = pneg %p3049_p3 }
  0x60   : > { %687 = vmatpush.bf16.msra.mxu0 %v2563_v15  ;;  %p3055_p9 = pnand %p3054_p8, %p3050_p5 }
  0x61   : > { %764 = vmatpush.bf16.msra.mxu1 %v2571_v16  ;;  %v2242_v16 = vld [vmem:[#allocation12 + $0x50] sm:$0xf] }
  0x62   : > { %841 = vmatpush.bf16.msra.mxu2 %v2579_v17  ;;  %v2595_v17 = vld [vmem:[#allocation12 + $0x54] sm:$0xf0] }
  0x64   : > { %688 = vmatpush.bf16.msra.mxu0 %v2562_v18  ;;  %v2594_v18 = vld [vmem:[#allocation12 + $0x54] sm:$0xf] }
  0x65   : > { %765 = vmatpush.bf16.msra.mxu1 %v2570_v19  ;;  %v2243_v19 = vor.u32 %v2595_v17, %v2242_v16  ;;  %v2605_v16 = vld [vmem:[#allocation14 + $0x28] sm:$0xff]  ;;  %v2611_v17 = vld [vmem:[#allocation14 + $0x58] sm:$0xff] }
  0x66   : > { %842 = vmatpush.bf16.msra.mxu2 %v2578_v20  ;;  %v2244_v20 = vld [vmem:[#allocation12 + $0x58] sm:$0xf0] }
  0x68   : > { %689 = vmatpush.bf16.msra.mxu0 %v2561_v21  ;;  %v2247_v21 = vor.u32 %v2594_v18, %v2244_v20  ;;  %v2604_v18 = vld [vmem:[#allocation14 + $0x20] sm:$0xff]  ;;  %v2603_v20 = vld [vmem:[#allocation14 + $0x18] sm:$0xff] }
  0x69   : > { %766 = vmatpush.bf16.msra.mxu1 %v2569_v22  ;;  %v2234_v22 = vld [vmem:[#allocation12 + $0x40] sm:$0xf] }
  0x6a   : > { %843 = vmatpush.bf16.msra.mxu2 %v2577_v23  ;;  %v2593_v23 = vld [vmem:[#allocation12 + $0x44] sm:$0xf0] }
  0x6c   : > { %690 = vmatpush.bf16.msra.mxu0 %v2560_v25  ;;  %v2235_v25 = vor.u32 %v2593_v23, %v2234_v22  ;;  %v2602_v22 = vld [vmem:[#allocation14 + $0x10] sm:$0xff]  ;;  %v2608_v23 = vld [vmem:[#allocation14 + $0x40] sm:$0xff] }
  0x6d   : > { %767 = vmatpush.bf16.msra.mxu1 %v2568_v26  ;;  %v2236_v26 = vld [vmem:[#allocation12 + $0x48] sm:$0xf0] }
  0x6e   : > { %844 = vmatpush.bf16.msra.mxu2 %v2576_v27 }
  0x70   : > { %1055 = vmatpush.bf16.msrb.mxu0 %v2263_v10 }
  0xc2   : > { %v589_v24 = vpop.xlane.xlu0 %588 }
  0xc3   : > { %v593_v28 = vmul.f32 0.0078125, %v589_v24  ;;  %v2592_v24 = vld [vmem:[#allocation12 + $0x44] sm:$0xf] }
  0xc4   : > { %v2239_v27 = vor.u32 %v2592_v24, %v2236_v26  ;;  %v2601_v24 = vld [vmem:[#allocation14 + $0x8] sm:$0xff]  ;;  %v2600_v26 = vld [vmem:[#allocation14] sm:$0xff] }
  0xc5   : > { %v595_v30 = vmul.f32 %v593_v28, %v593_v28  ;;  %v597_v40 = vsub.f32 %v3362_v1, %v593_v28  ;;  %v2226_v28 = vld [vmem:[#allocation12 + $0x30] sm:$0xf] }
  0xca   : > { %v592_v29 = vpop.xlane.xlu0 %591 }
  0xcb   : > { %v594_v31 = vmul.f32 0.0078125, %v592_v29  ;;  %v2591_v29 = vld [vmem:[#allocation12 + $0x34] sm:$0xf0] }
  0xcd   : > { %v596_v32 = vsub.f32 %v594_v31, %v595_v30  ;;  %v2590_v30 = vld [vmem:[#allocation12 + $0x34] sm:$0xf]  ;;  %v2227_v31 = vor.u32 %v2591_v29, %v2226_v28 }
  0xcf   : > { %v598_v33 = vadd.f32 1e-05, %v596_v32  ;;  %v2228_v32 = vld [vmem:[#allocation12 + $0x38] sm:$0xf0] }
  0xd1   : > { %2797 = vrsqrt.f32 %v598_v33  ;;  %vm605_vm1 = vweird.f32 %v598_v33 }
  0xd7   : > { %v2798_v34 = vpop.eup %2797 }
  0xd8   : > { %v600_v35 = vmul.f32 %v2798_v34, %v598_v33  ;;  %vm606_vm0 = vweird.f32 %v2798_v34  ;;  %v2231_v33 = vor.u32 %v2590_v30, %v2228_v32 }
  0xd9   : > { %vm607_vm2 = vmor %vm605_vm1, %vm606_vm0 }
  0xda   : > { %v601_v36 = vmul.f32 %v2798_v34, %v600_v35  ;;  %v2589_v35 = vld [vmem:[#allocation12 + $0x24] sm:$0xf0] }
  0xdc   : > { %v602_v37 = vmul.f32 0.5, %v601_v36  ;;  %v2588_v36 = vld [vmem:[#allocation12 + $0x24] sm:$0xf] }
  0xde   : > { %v603_v38 = vsub.f32 1.5, %v602_v37 }
  0xe0   : > { %v604_v39 = vmul.f32 %v2798_v34, %v603_v38  ;;  %v2220_v38 = vld [vmem:[#allocation12 + $0x28] sm:$0xf0] }
  0xe2   : > { %v608_v42 = vsel %vm607_vm2, %v2798_v34, %v604_v39  ;;  %v2218_v34 = vld [vmem:[#allocation12 + $0x20] sm:$0xf]  ;;  %v2223_v39 = vor.u32 %v2588_v36, %v2220_v38 }
  0xe3   : > { %v609_v43 = vmul.f32 %v608_v42, %v597_v40  ;;  %v2219_v37 = vor.u32 %v2589_v35, %v2218_v34  ;;  %v2587_v42 = vld [vmem:[#allocation12 + $0x14] sm:$0xf0] }
  0xe5   : > { %v613_v45 = vmul.f32 %v2787_v41, %v609_v43  ;;  %v2210_v41 = vld [vmem:[#allocation12 + $0x10] sm:$0xf]  ;;  %v2586_v43 = vld [vmem:[#allocation12 + $0x14] sm:$0xf] }
  0xe7   : > { %v617_v46 = vadd.f32 %v2788_v44, %v613_v45  ;;  %v2211_v44 = vor.u32 %v2587_v42, %v2210_v41  ;;  %v2212_v45 = vld [vmem:[#allocation12 + $0x18] sm:$0xf0] }
  0xe9   : > { %v618_v47 = vpack.c.bf16 %v617_v46, %v617_v46  ;;  %v2202_v46 = vld [vmem:[#allocation12] sm:$0xf] }
  0xeb   : > { %691 = vmatmul.bf16.vlgmr.msra.gmra.mxu0 %v618_v47  ;;  %768 = vmatmul.bf16.vlgmr.msra.gmra.mxu1 %v618_v47 }
  0xec   : > { %845 = vmatmul.bf16.vlgmr.msra.gmra.mxu2 %v618_v47  ;;  %v2215_v47 = vor.u32 %v2586_v43, %v2212_v45 }
 0x168   : > { %v692_v48 = vpop.f32.mrf.mxu0  ;;  %v769_v49 = vpop.f32.mrf.mxu1 }
 0x169   : > { %865 = vmatpush.xpose.msra.mxu3 %v769_v49  ;;  %v2584_v49 = vld [vmem:[#allocation12 + $0x4] sm:$0xf] }
 0x16c   : > { %866 = vmatmul.f32.vlgmr.msra.gmra.mxu3 %v692_v48  ;;  %v2585_v48 = vld [vmem:[#allocation12 + $0x4] sm:$0xf0] }
 0x16f   : > { %v846_v50 = vpop.f32.mrf.mxu2 }
 0x170   : > { %901 = vmatpush.msrb.mxu3 %v846_v50  ;;  %v694_v51 = vpop.f32.mrf.mxu0  ;;  %v771_v52 = vpop.f32.mrf.mxu1  ;;  %v2204_v50 = vld [vmem:[#allocation12 + $0x8] sm:$0xf0] }
 0x171   : > { %v2203_v51 = vor.u32 %v2585_v48, %v2202_v46  ;;  %v2207_v52 = vor.u32 %v2584_v49, %v2204_v50 }
 0x172   : > { %1042 = vmatpush.bf16.msra.mxu3 %v2259_v8 }
 0x176   : > { %1043 = vmatpush.bf16.msra.mxu3 %v2251_v14  ;;  %v2613_v14 = vld [vmem:[#allocation14 + $0x68] sm:$0xff] }
 0x177   : > { %v848_v53 = vpop.f32.mrf.mxu2 }
 0x17a   : > { %1044 = vmatpush.bf16.msra.mxu3 %v2243_v19  ;;  %v2610_v19 = vld [vmem:[#allocation14 + $0x50] sm:$0xff] }
 0x17e   : > { %1045 = vmatpush.bf16.msra.mxu3 %v2235_v25  ;;  %v956_v25 = vld [vmem:[%s3470_s7] sm:$0x3] }
 0x182   : > { %1046 = vmatpush.bf16.msra.mxu3 %v2227_v31  ;;  %v958_v31 = vperm.slane %v956_v25, 0 }
 0x186   : > { %1047 = vmatpush.bf16.msra.mxu3 %v2219_v37 }
 0x18a   : > { %1048 = vmatpush.bf16.msra.mxu3 %v2211_v44 }
 0x18e   : > { %1049 = vmatpush.bf16.msra.mxu3 %v2203_v51 }
 0x1ef   : > { %v867_v54 = vpop.f32.mrf.mxu3 }
 0x1f0   : > { %v870_v55 = vmul.f32 0.088388346, %v867_v54 }
 0x1f2   : > { %v872_v56 = vsel %vm871_vm3, %v870_v55, -inf }
 0x1f3   : > { %873 = vmax.xlane.f32.xlu1 %v872_v56 }
 0x266   : > { %v874_v57 = vpop.xlane.xlu1 %873 }
 0x267   : > { %v875_v58 = vsub.f32 %v870_v55, %v874_v57  ;;  %v2615_v57 = vld [vmem:[#allocation14 + $0x78] sm:$0xff] }
 0x268   : > { %1233 = vmatpush.bf16.msrb.mxu2 %v2615_v57 }
 0x269   : > { %v876_v59 = vmul.f32 1.442695, %v875_v58 }
 0x26b   : > { %2799 = vpow2.f32 %v876_v59  ;;  %v2614_v59 = vld [vmem:[#allocation14 + $0x70] sm:$0xff] }
 0x26c   : > { %1234 = vmatpush.bf16.msrb.mxu2 %v2614_v59 }
 0x270   : > { %1235 = vmatpush.bf16.msrb.mxu2 %v2613_v14  ;;  %v2627_v14 = vld [vmem:[#allocation8 + $0x58] sm:$0xff] }
 0x271   : > { %v2800_v60 = vpop.eup %2799 }
 0x272   : > { %v878_v61 = vsel %vm871_vm3, %v2800_v60, 0.0 }
 0x273   : > { %879 = vadd.xlane.f32.xlu1 %v878_v61 }
 0x2e6   : > { %v880_v62 = vpop.xlane.xlu1 %879 }
 0x2e7   : > { %2801 = vrcp.f32 %v880_v62 }
 0x2ed   : > { %v2802_v63 = vpop.eup %2801 }
 0x2ee   : > { %v882_v0 = vmul.f32 %v2802_v63, %v2800_v60 }
 0x2f0   : > { %2199 = vmatmul.msk.f32.vlgmr.msrb.gmra.mxu3 %vm871_vm3, %v882_v0 }
 0x373   : > { %v903_v2 = vpop.f32.mrf.mxu3 }
 0x374   : > { %v3375_v3 = vadd.f32 %v903_v2, %v3362_v1  ;;  %v2252_v1 = vld [vmem:[#allocation12 + $0x68] sm:$0xf0] }
 0x375   : > { %v2255_v15 = vor.u32 %v2596_v13, %v2252_v1  ;;  %v2607_v13 = vld [vmem:[#allocation14 + $0x38] sm:$0xff]  ;;  %v2606_v1 = vld [vmem:[#allocation14 + $0x30] sm:$0xff] }
 0x376   : > { %909 = vadd.xlane.f32.xlu2 %v3375_v3  ;;  %v911_v4 = vmul.f32 %v3375_v3, %v3375_v3  ;;  %1220 = vmatpush.bf16.msrb.mxu1 %v2607_v13  ;;  %v2619_v13 = vld [vmem:[#allocation6 + $0x58] sm:$0xff] }
 0x377   : > { %1056 = vmatpush.bf16.msrb.mxu0 %v2255_v15  ;;  %v2612_v15 = vld [vmem:[#allocation14 + $0x60] sm:$0xff] }
 0x378   : > { %1236 = vmatpush.bf16.msrb.mxu2 %v2612_v15  ;;  %v2618_v15 = vld [vmem:[#allocation6 + $0x50] sm:$0xff] }
 0x37a   : > { %1221 = vmatpush.bf16.msrb.mxu1 %v2606_v1  ;;  %v2635_v1 = vld [vmem:[#allocation9 + $0x58] sm:$0xff] }
 0x37b   : > { %1057 = vmatpush.bf16.msrb.mxu0 %v2247_v21  ;;  %v2609_v21 = vld [vmem:[#allocation14 + $0x48] sm:$0xff] }
 0x37c   : > { %1237 = vmatpush.bf16.msrb.mxu2 %v2611_v17  ;;  %v2634_v17 = vld [vmem:[#allocation9 + $0x50] sm:$0xff] }
 0x37e   : > { %912 = vadd.xlane.f32.xlu2 %v911_v4  ;;  %1222 = vmatpush.bf16.msrb.mxu1 %v2605_v16  ;;  %v2626_v16 = vld [vmem:[#allocation8 + $0x50] sm:$0xff] }
 0x37f   : > { %1058 = vmatpush.bf16.msrb.mxu0 %v2239_v27  ;;  %v959_v27 = vperm.slane %v956_v25, 1 }
 0x380   : > { %1238 = vmatpush.bf16.msrb.mxu2 %v2610_v19  ;;  %v2625_v19 = vld [vmem:[#allocation8 + $0x48] sm:$0xff] }
 0x382   : > { %1223 = vmatpush.bf16.msrb.mxu1 %v2604_v18  ;;  %v2617_v18 = vld [vmem:[#allocation6 + $0x48] sm:$0xff] }
 0x383   : > { %1059 = vmatpush.bf16.msrb.mxu0 %v2231_v33 }
 0x384   : > { %1239 = vmatpush.bf16.msrb.mxu2 %v2609_v21  ;;  %v2616_v21 = vld [vmem:[#allocation6 + $0x40] sm:$0xff] }
 0x386   : > { %1224 = vmatpush.bf16.msrb.mxu1 %v2603_v20  ;;  %v2633_v20 = vld [vmem:[#allocation9 + $0x48] sm:$0xff] }
 0x387   : > { %1060 = vmatpush.bf16.msrb.mxu0 %v2223_v39 }
 0x388   : > { %1240 = vmatpush.bf16.msrb.mxu2 %v2608_v23  ;;  %v2632_v23 = vld [vmem:[#allocation9 + $0x40] sm:$0xff] }
 0x38a   : > { %1225 = vmatpush.bf16.msrb.mxu1 %v2602_v22  ;;  %v2624_v22 = vld [vmem:[#allocation8 + $0x40] sm:$0xff] }
 0x38b   : > { %1061 = vmatpush.bf16.msrb.mxu0 %v2215_v47 }
 0x38e   : > { %1226 = vmatpush.bf16.msrb.mxu1 %v2601_v24 }
 0x38f   : > { %1062 = vmatpush.bf16.msrb.mxu0 %v2207_v52 }
 0x392   : > { %1227 = vmatpush.bf16.msrb.mxu1 %v2600_v26 }
 0x3e9   : > { %v910_v40 = vpop.xlane.xlu2 %909 }
 0x3ea   : > { %v914_v53 = vmul.f32 0.0078125, %v910_v40 }
 0x3ec   : > { %v916_v55 = vmul.f32 %v914_v53, %v914_v53  ;;  %v918_v5 = vsub.f32 %v3375_v3, %v914_v53 }
 0x3f1   : > { %v913_v54 = vpop.xlane.xlu2 %912 }
 0x3f2   : > { %v915_v56 = vmul.f32 0.0078125, %v913_v54 }
 0x3f4   : > { %v917_v58 = vsub.f32 %v915_v56, %v916_v55  ;;  %v2791_v55 = vld [vmem:[%s3500_s23] ss:$0 sm:$0xff] }
 0x3f6   : > { %v919_v60 = vadd.f32 1e-05, %v917_v58 }
 0x3f8   : > { %2803 = vrsqrt.f32 %v919_v60  ;;  %vm926_vm5 = vweird.f32 %v919_v60 }
 0x3fe   : > { %v2804_v61 = vpop.eup %2803 }
 0x3ff   : > { %v921_v62 = vmul.f32 %v2804_v61, %v919_v60  ;;  %vm927_vm4 = vweird.f32 %v2804_v61 }
 0x400   : > { %vm928_vm6 = vmor %vm926_vm5, %vm927_vm4 }
 0x401   : > { %v922_v63 = vmul.f32 %v2804_v61, %v921_v62 }
 0x403   : > { %v923_v0 = vmul.f32 0.5, %v922_v63 }
 0x405   : > { %v924_v2 = vsub.f32 1.5, %v923_v0  ;;  %v2623_v0 = vld [vmem:[#allocation6 + $0x78] sm:$0xff] }
 0x406   : > { %1347 = vmatpush.bf16.msrb.mxu3 %v2623_v0 }
 0x407   : > { %v925_v4 = vmul.f32 %v2804_v61, %v924_v2  ;;  %v2631_v2 = vld [vmem:[#allocation8 + $0x78] sm:$0xff] }
 0x408   : > { %1425 = vmatpush.bf16.msra.mxu0 %v2631_v2 }
 0x409   : > { %v929_v7 = vsel %vm928_vm6, %v2804_v61, %v925_v4  ;;  %v2639_v4 = vld [vmem:[#allocation9 + $0x78] sm:$0xff] }
 0x40a   : > { %v930_v8 = vmul.f32 %v929_v7, %v918_v5  ;;  %1503 = vmatpush.bf16.msra.mxu1 %v2639_v4  ;;  %v2622_v5 = vld [vmem:[#allocation6 + $0x70] sm:$0xff] }
 0x40b   : > { %v2638_v7 = vld [vmem:[#allocation9 + $0x70] sm:$0xff]  ;;  %1348 = vmatpush.bf16.msrb.mxu3 %v2622_v5  ;;  %v2655_v5 = vld [vmem:[#allocation12 + $0xf4] sm:$0xf0] }
 0x40c   : > { %v934_v10 = vmul.f32 %v2789_v6, %v930_v8  ;;  %v2630_v6 = vld [vmem:[#allocation8 + $0x70] sm:$0xff]  ;;  %v2629_v8 = vld [vmem:[#allocation8 + $0x68] sm:$0xff] }
 0x40d   : > { %1426 = vmatpush.bf16.msra.mxu0 %v2630_v6  ;;  %v2487_v4 = vld [vmem:[#allocation12 + $0xf0] sm:$0xf]  ;;  %v2654_v6 = vld [vmem:[#allocation12 + $0xf4] sm:$0xf] }
 0x40e   : > { %v938_v11 = vadd.f32 %v2790_v9, %v934_v10  ;;  %1504 = vmatpush.bf16.msra.mxu1 %v2638_v7  ;;  %v2637_v9 = vld [vmem:[#allocation9 + $0x68] sm:$0xff]  ;;  %v2620_v10 = vld [vmem:[#allocation6 + $0x60] sm:$0xff]  ;;  %v2488_v7 = vor.u32 %v2655_v5, %v2487_v4 }
 0x410   : > { %v939_v12 = vpack.c.bf16 %v938_v11, %v938_v11  ;;  %v2628_v11 = vld [vmem:[#allocation8 + $0x60] sm:$0xff] }
 0x411   : > { %1427 = vmatpush.bf16.msra.mxu0 %v2629_v8 }
 0x412   : > { %1050 = vmatmul.bf16.vlgmr.msra.gmra.mxu3 %v939_v12  ;;  %1063 = vmatmul.bf16.vlgmr.msrb.gmra.mxu0 %v939_v12  ;;  %v2636_v12 = vld [vmem:[#allocation9 + $0x60] sm:$0xff] }
 0x413   : > { %1505 = vmatpush.bf16.msra.mxu1 %v2637_v9  ;;  %v2479_v9 = vld [vmem:[#allocation12 + $0xe0] sm:$0xf] }
 0x415   : > { %1428 = vmatpush.bf16.msra.mxu0 %v2628_v11  ;;  %v2652_v11 = vld [vmem:[#allocation12 + $0xe4] sm:$0xf] }
 0x417   : > { %1506 = vmatpush.bf16.msra.mxu1 %v2636_v12 }
 0x419   : > { %1429 = vmatpush.bf16.msra.mxu0 %v2627_v14  ;;  %v2471_v14 = vld [vmem:[#allocation12 + $0xd0] sm:$0xf] }
 0x41b   : > { %1507 = vmatpush.bf16.msra.mxu1 %v2635_v1  ;;  %v2651_v1 = vld [vmem:[#allocation12 + $0xd4] sm:$0xf0] }
 0x41d   : > { %1430 = vmatpush.bf16.msra.mxu0 %v2626_v16  ;;  %v2472_v16 = vor.u32 %v2651_v1, %v2471_v14  ;;  %v2660_v14 = vld [vmem:[#allocation14 + $0xa0] sm:$0xff] }
 0x41e   : > { %v2668_v1 = vld [vmem:[#allocation14 + $0xe0] sm:$0xff] }
 0x41f   : > { %1508 = vmatpush.bf16.msra.mxu1 %v2634_v17  ;;  %v2473_v17 = vld [vmem:[#allocation12 + $0xd8] sm:$0xf0] }
 0x421   : > { %1431 = vmatpush.bf16.msra.mxu0 %v2625_v19  ;;  %v2463_v19 = vld [vmem:[#allocation12 + $0xc0] sm:$0xf] }
 0x423   : > { %1509 = vmatpush.bf16.msra.mxu1 %v2633_v20  ;;  %v2649_v20 = vld [vmem:[#allocation12 + $0xc4] sm:$0xf0] }
 0x425   : > { %1432 = vmatpush.bf16.msra.mxu0 %v2624_v22  ;;  %v2464_v22 = vor.u32 %v2649_v20, %v2463_v19  ;;  %v2657_v19 = vld [vmem:[#allocation14 + $0x88] sm:$0xff] }
 0x426   : > { %v2665_v20 = vld [vmem:[#allocation14 + $0xc8] sm:$0xff] }
 0x427   : > { %1510 = vmatpush.bf16.msra.mxu1 %v2632_v23  ;;  %v2465_v23 = vld [vmem:[#allocation12 + $0xc8] sm:$0xf0] }
 0x48f   : > { %v1064_v28 = vpop.f32.mrf.mxu0 }
 0x490   : > { %v1065_v29 = vadd.f32 %v1064_v28, %v959_v27 }
 0x492   : > { %v1071_v30 = vmul.f32 0.044715, %v1065_v29  ;;  %v1069_v46 = vmul.f32 0.5, %v1065_v29 }
 0x494   : > { %v1073_v32 = vmul.f32 %v1071_v30, %v1065_v29 }
 0x495   : > { %v1051_v33 = vpop.f32.mrf.mxu3 }
 0x496   : > { %v1052_v34 = vadd.f32 %v1051_v33, %v958_v31  ;;  %v1075_v35 = vmul.f32 %v1073_v32, %v1065_v29 }
 0x497   : > { %v1066_v36 = vpop.f32.mrf.mxu0 }
 0x498   : > { %v1070_v37 = vmul.f32 0.044715, %v1052_v34  ;;  %v1077_v38 = vadd.f32 %v1075_v35, %v1065_v29  ;;  %v1068_v51 = vmul.f32 0.5, %v1052_v34 }
 0x49a   : > { %v1072_v39 = vmul.f32 %v1070_v37, %v1052_v34  ;;  %v1079_v40 = vmul.f32 0.7978846, %v1077_v38  ;;  %v2792_v38 = vld [vmem:[%s3467_s4 + $0x1] ss:$0 sm:$0xff] }
 0x49c   : > { %2805 = vtanh.f32 %v1079_v40  ;;  %v1074_v41 = vmul.f32 %v1072_v39, %v1052_v34 }
 0x49d   : > { %v1053_v42 = vpop.f32.mrf.mxu3 }
 0x49e   : > { %v1076_v43 = vadd.f32 %v1074_v41, %v1052_v34  ;;  %v2793_v41 = vld [vmem:[#allocation11 + $0x1] ss:$0 sm:$0xff] }
 0x4a0   : > { %v1078_v44 = vmul.f32 0.7978846, %v1076_v43 }
 0x4a2   : > { %v2806_v45 = vpop.eup %2805  ;;  %2807 = vtanh.f32 %v1078_v44 }
 0x4a3   : > { %v1083_v47 = vadd.f32 1.0, %v2806_v45 }
 0x4a5   : > { %v1085_v48 = vmul.f32 %v1083_v47, %v1069_v46 }
 0x4a7   : > { %v1087_v49 = vpack.c.bf16 %v1085_v48, %v1085_v48 }
 0x4a8   : > { %v2808_v50 = vpop.eup %2807 }
 0x4a9   : > { %1241 = vmatmul.bf16.vlgmr.msrb.gmra.mxu2 %v1087_v49  ;;  %v1082_v52 = vadd.f32 1.0, %v2808_v50 }
 0x4ab   : > { %v1084_v53 = vmul.f32 %v1082_v52, %v1068_v51 }
 0x4ad   : > { %v1086_v54 = vpack.c.bf16 %v1084_v53, %v1084_v53 }
 0x4af   : > { %1228 = vmatmul.bf16.vlgmr.msrb.gmra.mxu1 %v1086_v54 }
 0x52c   : > { %v1229_v56 = vpop.f32.mrf.mxu1  ;;  %v1242_v57 = vpop.f32.mrf.mxu2 }
 0x52d   : > { %v1230_v58 = vadd.f32 %v2791_v55, %v1229_v56 }
 0x52f   : > { %v1243_v59 = vadd.f32 %v1242_v57, %v1230_v58 }
 0x531   : > { %v3394_v60 = vadd.f32 %v1243_v59, %v3375_v3  ;;  %v2621_v3 = vld [vmem:[#allocation6 + $0x68] sm:$0xff] }
 0x532   : > { %1349 = vmatpush.bf16.msrb.mxu3 %v2621_v3  ;;  %v2489_v3 = vld [vmem:[#allocation12 + $0xf8] sm:$0xf0] }
 0x533   : > { %1251 = vadd.xlane.f32.xlu0 %v3394_v60  ;;  %v1253_v61 = vmul.f32 %v3394_v60, %v3394_v60  ;;  %v2492_v8 = vor.u32 %v2654_v6, %v2489_v3 }
 0x534   : > { %v1231_v62 = vpop.f32.mrf.mxu1  ;;  %v1244_v63 = vpop.f32.mrf.mxu2 }
 0x535   : > { %1254 = vadd.xlane.f32.xlu1 %v1253_v61 }
 0x536   : > { %1350 = vmatpush.bf16.msrb.mxu3 %v2620_v10  ;;  %v2653_v10 = vld [vmem:[#allocation12 + $0xe4] sm:$0xf0] }
 0x537   : > { %v2480_v12 = vor.u32 %v2653_v10, %v2479_v9  ;;  %v2795_v9 = vld [vmem:[%s3474_s11 + $0x1] ss:$0 sm:$0xff] }
 0x53a   : > { %1351 = vmatpush.bf16.msrb.mxu3 %v2619_v13 }
 0x53e   : > { %1352 = vmatpush.bf16.msrb.mxu3 %v2618_v15  ;;  %v2650_v15 = vld [vmem:[#allocation12 + $0xd4] sm:$0xf] }
 0x542   : > { %1353 = vmatpush.bf16.msrb.mxu3 %v2617_v18  ;;  %v2476_v18 = vor.u32 %v2650_v15, %v2473_v17  ;;  %v2659_v15 = vld [vmem:[#allocation14 + $0x98] sm:$0xff]  ;;  %v2658_v17 = vld [vmem:[#allocation14 + $0x90] sm:$0xff] }
 0x546   : > { %1354 = vmatpush.bf16.msrb.mxu3 %v2616_v21  ;;  %v2648_v21 = vld [vmem:[#allocation12 + $0xc4] sm:$0xf] }
 0x54a   : > { %1711 = vmatpush.bf16.msra.mxu3 %v2488_v7  ;;  %v2794_v7 = vld [vmem:[%s3473_s10 + $0x1] ss:$0 sm:$0xff] }
 0x54e   : > { %1712 = vmatpush.bf16.msra.mxu3 %v2480_v12 }
 0x552   : > { %1713 = vmatpush.bf16.msra.mxu3 %v2472_v16  ;;  %v2667_v16 = vld [vmem:[#allocation14 + $0xd8] sm:$0xff] }
 0x556   : > { %1714 = vmatpush.bf16.msra.mxu3 %v2464_v22  ;;  %v2664_v22 = vld [vmem:[#allocation14 + $0xc0] sm:$0xff] }
 0x5a6   : > { %v1252_v24 = vpop.xlane.xlu0 %1251 }
 0x5a7   : > { %v1256_v25 = vmul.f32 0.0078125, %v1252_v24  ;;  %v2468_v24 = vor.u32 %v2648_v21, %v2465_v23  ;;  %v2656_v21 = vld [vmem:[#allocation14 + $0x80] sm:$0xff]  ;;  %v2428_v23 = vld [vmem:[%s3470_s7 + $0x2] sm:$0x3] }
 0x5a8   : > { %v1255_v26 = vpop.xlane.xlu1 %1254 }
 0x5a9   : > { %v1258_v27 = vmul.f32 %v1256_v25, %v1256_v25  ;;  %v1257_v28 = vmul.f32 0.0078125, %v1255_v26  ;;  %v1260_v37 = vsub.f32 %v3394_v60, %v1256_v25  ;;  %v2455_v25 = vld [vmem:[#allocation12 + $0xb0] sm:$0xf]  ;;  %v2647_v26 = vld [vmem:[#allocation12 + $0xb4] sm:$0xf0] }
 0x5ab   : > { %v1259_v29 = vsub.f32 %v1257_v28, %v1258_v27  ;;  %v2646_v27 = vld [vmem:[#allocation12 + $0xb4] sm:$0xf]  ;;  %v2456_v28 = vor.u32 %v2647_v26, %v2455_v25  ;;  %v1628_v25 = vperm.slane %v2428_v23, 1 }
 0x5ad   : > { %v1261_v30 = vadd.f32 1e-05, %v1259_v29  ;;  %v2457_v29 = vld [vmem:[#allocation12 + $0xb8] sm:$0xf0]  ;;  %1715 = vmatpush.bf16.msra.mxu3 %v2456_v28 }
 0x5af   : > { %2809 = vrsqrt.f32 %v1261_v30  ;;  %vm1268_vm8 = vweird.f32 %v1261_v30 }
 0x5b5   : > { %v2810_v31 = vpop.eup %2809 }
 0x5b6   : > { %v1263_v32 = vmul.f32 %v2810_v31, %v1261_v30  ;;  %vm1269_vm7 = vweird.f32 %v2810_v31  ;;  %v2460_v30 = vor.u32 %v2646_v27, %v2457_v29 }
 0x5b7   : > { %vm1270_vm9 = vmor %vm1268_vm8, %vm1269_vm7 }
 0x5b8   : > { %v1264_v33 = vmul.f32 %v2810_v31, %v1263_v32  ;;  %v2645_v32 = vld [vmem:[#allocation12 + $0xa4] sm:$0xf0] }
 0x5ba   : > { %v1265_v34 = vmul.f32 0.5, %v1264_v33  ;;  %v2644_v33 = vld [vmem:[#allocation12 + $0xa4] sm:$0xf] }
 0x5bc   : > { %v1266_v35 = vsub.f32 1.5, %v1265_v34 }
 0x5be   : > { %v1267_v36 = vmul.f32 %v2810_v31, %v1266_v35  ;;  %v2449_v35 = vld [vmem:[#allocation12 + $0xa8] sm:$0xf0] }
 0x5c0   : > { %v1271_v39 = vsel %vm1270_vm9, %v2810_v31, %v1267_v36  ;;  %v2447_v31 = vld [vmem:[#allocation12 + $0xa0] sm:$0xf]  ;;  %v2452_v36 = vor.u32 %v2644_v33, %v2449_v35 }
 0x5c1   : > { %v1272_v40 = vmul.f32 %v1271_v39, %v1260_v37  ;;  %v2448_v34 = vor.u32 %v2645_v32, %v2447_v31  ;;  %v2439_v37 = vld [vmem:[#allocation12 + $0x90] sm:$0xf]  ;;  %v2642_v39 = vld [vmem:[#allocation12 + $0x94] sm:$0xf] }
 0x5c3   : > { %v1276_v42 = vmul.f32 %v2792_v38, %v1272_v40  ;;  %1716 = vmatpush.bf16.msra.mxu3 %v2448_v34  ;;  %v2643_v38 = vld [vmem:[#allocation12 + $0x94] sm:$0xf0] }
 0x5c4   : > { %v2440_v40 = vor.u32 %v2643_v38, %v2439_v37 }
 0x5c5   : > { %v1280_v43 = vadd.f32 %v2793_v41, %v1276_v42  ;;  %v2441_v41 = vld [vmem:[#allocation12 + $0x98] sm:$0xf0]  ;;  %v2431_v42 = vld [vmem:[#allocation12 + $0x80] sm:$0xf] }
 0x5c7   : > { %v1281_v44 = vpack.c.bf16 %v1280_v43, %v1280_v43  ;;  %v2641_v43 = vld [vmem:[#allocation12 + $0x84] sm:$0xf0]  ;;  %1717 = vmatpush.bf16.msra.mxu3 %v2440_v40 }
 0x5c9   : > { %1355 = vmatmul.bf16.vlgmr.msrb.gmra.mxu3 %v1281_v44  ;;  %1433 = vmatmul.bf16.vlgmr.msra.gmra.mxu0 %v1281_v44 }
 0x5ca   : > { %1511 = vmatmul.bf16.vlgmr.msra.gmra.mxu1 %v1281_v44  ;;  %v2444_v44 = vor.u32 %v2642_v39, %v2441_v41 }
 0x646   : > { %v1434_v45 = vpop.f32.mrf.mxu0 }
 0x647   : > { %v1512_v46 = vpop.f32.mrf.mxu1  ;;  %1531 = vmatpush.xpose.msra.mxu2 %v1434_v45  ;;  %v2640_v45 = vld [vmem:[#allocation12 + $0x84] sm:$0xf] }
 0x64b   : > { %1566 = vmatpush.msrb.mxu2 %v1512_v46  ;;  %v2433_v46 = vld [vmem:[#allocation12 + $0x88] sm:$0xf0] }
 0x64c   : > { %v1356_v47 = vpop.f32.mrf.mxu3 }
 0x64d   : > { %1532 = vmatmul.f32.vlgmr.msra.gmra.mxu2 %v1356_v47  ;;  %v2432_v47 = vor.u32 %v2641_v43, %v2431_v42 }
 0x64e   : > { %v1436_v48 = vpop.f32.mrf.mxu0  ;;  %1724 = vmatpush.bf16.msra.mxu2 %v2492_v8 }
 0x64f   : > { %v1514_v49 = vpop.f32.mrf.mxu1  ;;  %v2436_v48 = vor.u32 %v2640_v45, %v2433_v46  ;;  %1718 = vmatpush.bf16.msra.mxu3 %v2432_v47 }
 0x654   : > { %v1358_v50 = vpop.f32.mrf.mxu3 }
 0x6d0   : > { %v1533_v51 = vpop.f32.mrf.mxu2 }
 0x6d1   : > { %v1536_v52 = vmul.f32 0.088388346, %v1533_v51 }
 0x6d3   : > { %v1537_v53 = vsel %vm871_vm3, %v1536_v52, -inf }
 0x6d4   : > { %1538 = vmax.xlane.f32.xlu2 %v1537_v53 }
 0x747   : > { %v1539_v54 = vpop.xlane.xlu2 %1538 }
 0x748   : > { %v1540_v55 = vsub.f32 %v1536_v52, %v1539_v54  ;;  %v2663_v54 = vld [vmem:[#allocation14 + $0xb8] sm:$0xff] }
 0x749   : > { %1891 = vmatpush.bf16.msrb.mxu0 %v2663_v54  ;;  %v2796_v54 = vld [vmem:[%s3500_s23 + $0x1] ss:$0 sm:$0xff] }
 0x74a   : > { %v1541_v56 = vmul.f32 1.442695, %v1540_v55  ;;  %v2671_v55 = vld [vmem:[#allocation14 + $0xf8] sm:$0xff] }
 0x74b   : > { %1904 = vmatpush.bf16.msrb.mxu1 %v2671_v55 }
 0x74c   : > { %2811 = vpow2.f32 %v1541_v56 }
 0x752   : > { %v2812_v57 = vpop.eup %2811 }
 0x753   : > { %v1543_v58 = vsel %vm871_vm3, %v2812_v57, 0.0 }
 0x754   : > { %1544 = vadd.xlane.f32.xlu0 %v1543_v58  ;;  %v2670_v58 = vld [vmem:[#allocation14 + $0xf0] sm:$0xff] }
 0x755   : > { %1905 = vmatpush.bf16.msrb.mxu1 %v2670_v58 }
 0x7c7   : > { %v1545_v59 = vpop.xlane.xlu0 %1544 }
 0x7c8   : > { %2813 = vrcp.f32 %v1545_v59 }
 0x7ce   : > { %v2814_v61 = vpop.eup %2813 }
 0x7cf   : > { %v1547_v62 = vmul.f32 %v2814_v61, %v2812_v57  ;;  %v2662_v57 = vld [vmem:[#allocation14 + $0xb0] sm:$0xff] }
 0x7d0   : > { %1892 = vmatpush.bf16.msrb.mxu0 %v2662_v57 }
 0x7d1   : > { %2425 = vmatmul.msk.f32.vlgmr.msrb.gmra.mxu2 %vm871_vm3, %v1547_v62 }
 0x854   : > { %v1568_v63 = vpop.f32.mrf.mxu2 }
 0x855   : > { %v3407_v0 = vadd.f32 %v1568_v63, %v3394_v60  ;;  %v2481_v60 = vld [vmem:[#allocation12 + $0xe8] sm:$0xf0] }
 0x856   : > { %v2484_v13 = vor.u32 %v2652_v11, %v2481_v60  ;;  %v2661_v60 = vld [vmem:[#allocation14 + $0xa8] sm:$0xff] }
 0x857   : > { %1576 = vadd.xlane.f32.xlu1 %v3407_v0  ;;  %v1578_v2 = vmul.f32 %v3407_v0, %v3407_v0  ;;  %1893 = vmatpush.bf16.msrb.mxu0 %v2661_v60 }
 0x858   : > { %1725 = vmatpush.bf16.msra.mxu2 %v2484_v13  ;;  %v2669_v13 = vld [vmem:[#allocation14 + $0xe8] sm:$0xff] }
 0x859   : > { %1579 = vadd.xlane.f32.xlu2 %v1578_v2  ;;  %1906 = vmatpush.bf16.msrb.mxu1 %v2669_v13 }
 0x85b   : > { %1894 = vmatpush.bf16.msrb.mxu0 %v2660_v14 }
 0x85c   : > { %1726 = vmatpush.bf16.msra.mxu2 %v2476_v18  ;;  %v2666_v18 = vld [vmem:[#allocation14 + $0xd0] sm:$0xff] }
 0x85d   : > { %1907 = vmatpush.bf16.msrb.mxu1 %v2668_v1 }
 0x85f   : > { %1895 = vmatpush.bf16.msrb.mxu0 %v2659_v15 }
 0x860   : > { %1727 = vmatpush.bf16.msra.mxu2 %v2468_v24  ;;  %v1627_v24 = vperm.slane %v2428_v23, 0 }
 0x861   : > { %1908 = vmatpush.bf16.msrb.mxu1 %v2667_v16 }
 0x863   : > { %1896 = vmatpush.bf16.msrb.mxu0 %v2658_v17 }
 0x864   : > { %1728 = vmatpush.bf16.msra.mxu2 %v2460_v30 }
 0x865   : > { %1909 = vmatpush.bf16.msrb.mxu1 %v2666_v18 }
 0x867   : > { %1897 = vmatpush.bf16.msrb.mxu0 %v2657_v19 }
 0x868   : > { %1729 = vmatpush.bf16.msra.mxu2 %v2452_v36 }
 0x869   : > { %1910 = vmatpush.bf16.msrb.mxu1 %v2665_v20 }
 0x86b   : > { %1898 = vmatpush.bf16.msrb.mxu0 %v2656_v21 }
 0x86c   : > { %1730 = vmatpush.bf16.msra.mxu2 %v2444_v44 }
 0x86d   : > { %1911 = vmatpush.bf16.msrb.mxu1 %v2664_v22 }
 0x870   : > { %1731 = vmatpush.bf16.msra.mxu2 %v2436_v48 }
 0x8ca   : > { %v1577_v49 = vpop.xlane.xlu1 %1576 }
 0x8cb   : > { %v1581_v50 = vmul.f32 0.0078125, %v1577_v49 }
 0x8cc   : > { %v1580_v51 = vpop.xlane.xlu2 %1579 }
 0x8cd   : > { %v1583_v52 = vmul.f32 %v1581_v50, %v1581_v50  ;;  %v1582_v53 = vmul.f32 0.0078125, %v1580_v51  ;;  %v1585_v6 = vsub.f32 %v3407_v0, %v1581_v50 }
 0x8cf   : > { %v1584_v56 = vsub.f32 %v1582_v53, %v1583_v52  ;;  %v1919_v52 = vld [vmem:[#allocation2] sm:$0x1]  ;;  %v3123_v53 = vmov 0  }
 0x8d0   : > { %2786 = vset.pattern.permute.xlu0 %v3123_v53 }
 0x8d1   : > { %v1586_v59 = vadd.f32 1e-05, %v1584_v56  ;;  %1922 = vperm.xlu0 %2786, %v1919_v52  }
 0x8d3   : > { %2815 = vrsqrt.f32 %v1586_v59  ;;  %vm1593_vm11 = vweird.f32 %v1586_v59 }
 0x8d9   : > { %v2816_v61 = vpop.eup %2815 }
 0x8da   : > { %v1588_v62 = vmul.f32 %v2816_v61, %v1586_v59  ;;  %vm1594_vm10 = vweird.f32 %v2816_v61 }
 0x8db   : > { %vm1595_vm12 = vmor %vm1593_vm11, %vm1594_vm10 }
 0x8dc   : > { %v1589_v63 = vmul.f32 %v2816_v61, %v1588_v62 }
 0x8de   : > { %v1590_v2 = vmul.f32 0.5, %v1589_v63 }
 0x8e0   : > { %v1591_v4 = vsub.f32 1.5, %v1590_v2 }
 0x8e2   : > { %v1592_v5 = vmul.f32 %v2816_v61, %v1591_v4 }
 0x8e4   : > { %v1596_v3 = vsel %vm1595_vm12, %v2816_v61, %v1592_v5  ;;  %v1918_v61 = vld [vmem:[%s3501_s9] sm:$0x1] }
 0x8e5   : > { %v1597_v8 = vmul.f32 %v1596_v3, %v1585_v6 }
 0x8e7   : > { %v1601_v10 = vmul.f32 %v2794_v7, %v1597_v8 }
 0x8e9   : > { %v1605_v11 = vadd.f32 %v2795_v9, %v1601_v10 }
 0x8eb   : > { %v1606_v12 = vpack.c.bf16 %v1605_v11, %v1605_v11 }
 0x8ed   : > { %1719 = vmatmul.bf16.vlgmr.msra.gmra.mxu3 %v1606_v12  ;;  %1732 = vmatmul.bf16.vlgmr.msra.gmra.mxu2 %v1606_v12 }
 0x943   : > { %v1923_v2 = vpop.permute.xlu0 %1922 }
 0x944   : > { %v1925_v4 = vperm.slane %v1923_v2, 0 }
 0x970   : > { %v1720_v26 = vpop.f32.mrf.mxu3  ;;  %v1733_v27 = vpop.f32.mrf.mxu2 }
 0x971   : > { %v1721_v28 = vadd.f32 %v1720_v26, %v1627_v24  ;;  %v1734_v29 = vadd.f32 %v1733_v27, %v1628_v25 }
 0x973   : > { %v1739_v30 = vmul.f32 0.044715, %v1721_v28  ;;  %v1740_v31 = vmul.f32 0.044715, %v1734_v29  ;;  %v1737_v44 = vmul.f32 0.5, %v1721_v28  ;;  %v1738_v46 = vmul.f32 0.5, %v1734_v29 }
 0x975   : > { %v1741_v32 = vmul.f32 %v1739_v30, %v1721_v28  ;;  %v1742_v33 = vmul.f32 %v1740_v31, %v1734_v29 }
 0x977   : > { %v1743_v34 = vmul.f32 %v1741_v32, %v1721_v28  ;;  %v1744_v35 = vmul.f32 %v1742_v33, %v1734_v29 }
 0x978   : > { %v1722_v36 = vpop.f32.mrf.mxu3  ;;  %v1735_v37 = vpop.f32.mrf.mxu2 }
 0x979   : > { %v1745_v38 = vadd.f32 %v1743_v34, %v1721_v28  ;;  %v1746_v39 = vadd.f32 %v1744_v35, %v1734_v29 }
 0x97b   : > { %v1747_v40 = vmul.f32 0.7978846, %v1745_v38  ;;  %v1748_v41 = vmul.f32 0.7978846, %v1746_v39 }
 0x97d   : > { %2817 = vtanh.f32 %v1747_v40 }
 0x97e   : > { %2819 = vtanh.f32 %v1748_v41 }
 0x983   : > { %v2818_v42 = vpop.eup %2817 }
 0x984   : > { %v2820_v43 = vpop.eup %2819  ;;  %v1751_v45 = vadd.f32 1.0, %v2818_v42 }
 0x985   : > { %v1752_v47 = vadd.f32 1.0, %v2820_v43 }
 0x986   : > { %v1753_v48 = vmul.f32 %v1751_v45, %v1737_v44 }
 0x987   : > { %v1754_v49 = vmul.f32 %v1752_v47, %v1738_v46 }
 0x988   : > { %v1755_v50 = vpack.c.bf16 %v1753_v48, %v1753_v48 }
 0x989   : > { %v1756_v51 = vpack.c.bf16 %v1754_v49, %v1754_v49 }
 0x98a   : > { %1899 = vmatmul.bf16.vlgmr.msrb.gmra.mxu0 %v1755_v50 }
 0x98b   : > { %1912 = vmatmul.bf16.vlgmr.msrb.gmra.mxu1 %v1756_v51 }
 0xa07   : > { %v1900_v55 = vpop.f32.mrf.mxu0 }
 0xa08   : > { %v1901_v56 = vadd.f32 %v2796_v54, %v1900_v55  ;;  %v1913_v57 = vpop.f32.mrf.mxu1 }
 0xa0a   : > { %v1914_v58 = vadd.f32 %v1913_v57, %v1901_v56 }
 0xa0c   : > { %v1917_v59 = vadd.f32 %v1914_v58, %v3407_v0 }
 0xa0e   : > { %1941 = vmatpush.xpose.msrb.mxu3 %v1917_v59 }
 0xa0f   : > { %v1902_v62 = vpop.f32.mrf.mxu0 }
 0xa10   : > { %v1915_v63 = vpop.f32.mrf.mxu1 }
 0xa11   : > { %1942 = vmatmul.f32.vlgmr.msrb.gmra.mxu3 %v1918_v61 }
 0xa94   : > { %v1943_v0 = vpop.f32.mrf.mxu3 }
 0xa95   : > { %v1944_v5 = vadd.f32 %v1943_v0, %v1925_v4 }
 0xa97   : > { %1947 = vst.msk [vmem:[%s584_s13] sm:$0x1] %vm1946_vm13, %v1944_v5 }
 0xa98   : > { %3058 = shalt.err (!%p3055_p9)
}
 0xa99   : > { %2698 = dma.vmem_to_hbm [thread:$0]  (%p3311_p4), %s1960_s2, 16, %s1962_s5, %s1949_s22  }
 0xa9a PF: > { %s1973_s14 = sand.u32 1, %s3097_s15   ;;  %p3503_p10 = scmp.ge.s32.totalorder %s3109_s18, 2 }
 0xa9b   : > { %s1974_s12 = scalar_lea.sflag [#allocation5], %s1973_s14 }
 0xa9c   : > { %p2724_p13 = pnand %p3503_p10, %p3315_p6 }
 0xa9e   : > { %p2725_p11 = pneg %p2724_p13 }
 0xaa0   : > { %3092 = dma.done.wait (%p2725_p11), %s1974_s12, 16  }
 0xaa1   : > { %3094 = vsyncadd (%p2725_p11), %s1974_s12, 4294967280  ;;  %p32_p0 = scmp.ge.s32.totalorder %s3285_s19, 4   ;;  %s3504_s15 = smov %s3101_s16 }
 0xaa2   : > { %s3505_s16 = smov %s3105_s17  ;;  %s3506_s17 = smov %s3296_s27 }
 0xaa3   : > { %s3507_s18 = smov %s3285_s19  ;;  %34 = sbr.rel (!%p32_p0) target bundleno = 17 (0x11), region = 156 }
 0xaa8   :  { %1979 = vsyncpa [#allocation4], 1 }
 0xaa9   :  { %1981 = vsyncpa [#allocation4 + $0x1], 1 }
 0xaaa   :  { %1982 = vsyncpa [#allocation7], 1 }
 0xaab   :  { %1983 = vsyncpa [#allocation10], 1 }
 0xaac   :  { %1984 = vsyncpa [#allocation13], 1 }
 0xaad   :  { %1985 = vsyncpa [#allocation5], 1 }
 0xaae   :  { %1987 = vsyncpa [#allocation5 + $0x1], 1 }

</bundles_post_ra>
